<compile_context>
chip_gen: v5e
topology: v5e:2x2
jax: 0.10.0
libtpu: 0.0.40
codegen_flags: <defaults>
</compile_context>

<pallas_src>
import functools

import jax
import jax.numpy as jnp
import numpy as np
from jax.experimental import pallas as pl
from jax.experimental.pallas import tpu as pltpu

DIM = 32          # embedding dim (PyTorch default is 128; small shape for demo)
HEAD = 4          # number of attention heads
NUM_BLOCKS = 3
BATCH = 2
SEQ = 8           # number of "inner" tokens
SEQ_LEAF = 12     # leaf is an opaque pass-through, arbitrary length


# ----------------------------------------------------------------------------
# Fused kernel: all AttnBlocks, whole batch, single invocation (no grid).
# ----------------------------------------------------------------------------
def hier_attn_kernel(x_ref, headmask_ref, addmask_ref, pool_ref,
                     wq_ref, bq_ref, wk_ref, bk_ref, wv_ref, bv_ref,
                     wo_ref, bo_ref, wla_ref, wlx_ref, bl_ref,
                     inner_out_ref, root_out_ref, *, num_heads):
    BS, D = x_ref.shape                     # BS = B*S (whole-batch activation slab)
    H = num_heads
    num_blocks = wq_ref.shape[0]

    # headmask[j, d] = 1 iff lane d belongs to the head of slab row j
    # (slab row order is head-major: j = h*(B*S) + b*S + t).
    headmask = headmask_ref[...]            # (H*B*S, D) f32
    # addmask[i, j] = 0 for same-batch columns, -1e30 for cross-batch columns.
    addmask = addmask_ref[...]              # (B*S, H*B*S) f32
    pool = pool_ref[...]                    # (B, B*S) f32 sequence-sum pooling

    x = x_ref[...].astype(jnp.float32)      # (B*S, D), carried across blocks

    for blk in range(num_blocks):           # static unroll: all blocks fused (NB=3)
        # ---- Q/K/V projections: three lane-0-aligned MXU pushes. The softmax
        #      scale 1/sqrt(dh) is already folded into wq/bq on the host. -------
        q = jnp.dot(x, wq_ref[blk], preferred_element_type=jnp.float32) + bq_ref[blk]
        k = jnp.dot(x, wk_ref[blk], preferred_element_type=jnp.float32) + bk_ref[blk]
        v = jnp.dot(x, wv_ref[blk], preferred_element_type=jnp.float32) + bv_ref[blk]

        # ---- Head-block-diagonal K/V slabs for the WHOLE batch: replicate the
        #      (B*S, D) slab H times along sublanes (one broadcast+reshape) and
        #      zero lanes outside each slab row's head. -------------------------
        k_bd = jnp.broadcast_to(k[None], (H, BS, D)).reshape(H * BS, D) * headmask
        v_bd = jnp.broadcast_to(v[None], (H, BS, D)).reshape(H * BS, D) * headmask

        # ---- ONE score matmul for all batches & heads. Cross-batch columns are
        #      pushed to -1e30 BEFORE the row max, so they never influence it and
        #      exp() maps them to exactly 0. (Row max is global over the batch's
        #      valid columns; exact softmax unless a head's scores sit >~88 below
        #      the global max — impossible at these scales.) ---------------------
        sc = jnp.einsum("sd,td->st", q, k_bd,
                        preferred_element_type=jnp.float32) + addmask   # (B*S, H*B*S)
        sc = sc - jnp.max(sc, axis=-1, keepdims=True)
        p = jnp.exp(sc)                                                 # un-normalised

        # ---- Per-head softmax denominators (broadcast into each head's lanes)
        #      and un-normalised PV product: one matmul each. --------------------
        denom = jnp.dot(p, headmask, preferred_element_type=jnp.float32)  # (B*S, D)
        o_un = jnp.dot(p, v_bd, preferred_element_type=jnp.float32)       # (B*S, D)
        r = pl.reciprocal(denom, approx=True)        # EUP slot (effectively free)
        r = r * (2.0 - denom * r)                    # one Newton step -> f32-accurate
        attn = o_un * r

        # ---- MultiheadAttention output projection. -----------------------------
        attn = (jnp.dot(attn, wo_ref[blk], preferred_element_type=jnp.float32)
                + bo_ref[blk])

        # ---- cat([attn, x], -1) @ Wl  ==  attn @ Wl[:D] + x @ Wl[D:] ----------
        y = (jnp.dot(attn, wla_ref[blk], preferred_element_type=jnp.float32)
             + jnp.dot(x, wlx_ref[blk], preferred_element_type=jnp.float32)
             + bl_ref[blk])
        x = jnp.maximum(y, 0.0)                      # ReLU -> next block

    inner_out_ref[...] = x.astype(inner_out_ref.dtype)
    # root[b] = sum over that batch element's S rows (tiny pooling matmul).
    root_out_ref[...] = jnp.dot(pool, x,
                                preferred_element_type=jnp.float32
                                ).astype(root_out_ref.dtype)


# ----------------------------------------------------------------------------
# Host-side constant masks
# ----------------------------------------------------------------------------
def _head_mask(num_heads, batch, seq, dim):
    """(H*B*S, D): 1 iff lane d belongs to the head of slab row j (head-major)."""
    dh = dim // num_heads
    rows = np.arange(num_heads * batch * seq) // (batch * seq)
    cols = np.arange(dim) // dh
    return jnp.asarray((rows[:, None] == cols[None, :]).astype(np.float32))


def _batch_add_mask(num_heads, batch, seq, neg=-1e30):
    """(B*S, H*B*S): 0 where query row and slab column share a batch, else -1e30."""
    row_b = np.arange(batch * seq) // seq
    col_b = (np.arange(num_heads * batch * seq) % (batch * seq)) // seq
    return jnp.asarray(np.where(row_b[:, None] == col_b[None, :], 0.0, neg)
                       .astype(np.float32))


def _batch_pool(batch, seq):
    r = np.arange(batch)[:, None]
    c = np.arange(batch * seq)[None, :] // seq
    return jnp.asarray((r == c).astype(np.float32))          # (B, B*S)


# ----------------------------------------------------------------------------
# Host wrapper
# ----------------------------------------------------------------------------
def hier_attn_pallas(inner, params, *, num_heads):
    """Run all fused AttnBlocks on `inner` (B, S, D); returns (inner_new, root)."""
    B, S, D = inner.shape
    NB = params["wqkv"].shape[0]
    H = num_heads
    dh = D // H
    scale = 1.0 / float(np.sqrt(dh))

    # Host-side weight prep: split packed QKV into three lane-0-aligned (D, D)
    # matmuls, fold the softmax scale into Q, split the (2D, D) final Linear so
    # the kernel never does a lane-dimension slice or concatenation.
    wq = params["wqkv"][:, :, 0:D] * scale
    wk = params["wqkv"][:, :, D:2 * D]
    wv = params["wqkv"][:, :, 2 * D:3 * D]
    bq = params["bqkv"][:, :, 0:D] * scale
    bk = params["bqkv"][:, :, D:2 * D]
    bv = params["bqkv"][:, :, 2 * D:3 * D]
    wla = params["wl"][:, :D, :]
    wlx = params["wl"][:, D:, :]

    x2d = inner.reshape(B * S, D)                 # one lane/sublane-dense slab
    headmask = _head_mask(H, B, S, D)             # (H*B*S, D)
    addmask = _batch_add_mask(H, B, S)            # (B*S, H*B*S)
    pool = _batch_pool(B, S)                      # (B, B*S)

    ins = (x2d, headmask, addmask, pool,
           wq, bq, wk, bk, wv, bv,
           params["wo"], params["bo"], wla, wlx, params["bl"])
    out_shape = (jax.ShapeDtypeStruct((B * S, D), inner.dtype),
                 jax.ShapeDtypeStruct((B, D), inner.dtype))

    flops = NB * (3 * 2 * B * S * D * D                 # Q, K, V projections
                  + 3 * 2 * (B * S) * (H * B * S) * D   # scores + denom + PV matmuls
                  + 2 * B * S * D * D                   # out projection
                  + 2 * 2 * B * S * D * D)              # split final Linear
    transcendentals = NB * ((B * S) * (H * B * S) + B * S * D)   # exp + reciprocal
    bytes_accessed = int(sum(int(np.prod(a.shape)) * a.dtype.itemsize for a in ins)
                         + (B * S * D + B * D) * np.dtype(inner.dtype).itemsize)

    kernel = functools.partial(hier_attn_kernel, num_heads=H)
    inner2d, root = pl.pallas_call(
        kernel,
        out_shape=out_shape,
        cost_estimate=pl.CostEstimate(flops=int(flops),
                                      transcendentals=int(transcendentals),
                                      bytes_accessed=bytes_accessed),
        compiler_params=pltpu.CompilerParams(vmem_limit_bytes=32 * 1024 * 1024),
    )(*ins)
    return inner2d.reshape(B, S, D), root


@jax.jit
def hier_attn_forward(leaf, inner, root, params):
    inner_new, root_new = hier_attn_pallas(inner, params, num_heads=HEAD)
    return leaf, inner_new, root_new


# ----------------------------------------------------------------------------
# Parameter init (deterministic, synthetic). Weights stored already transposed
# (in_dim, out_dim) so both the kernel and the reference compute x @ W.
# ----------------------------------------------------------------------------
def init_params(key, dim, num_blocks):
    ks = jax.random.split(key, 4 * num_blocks)
    s = 0.05
    wqkv, bqkv, wo, bo, wl, bl = [], [], [], [], [], []
    for i in range(num_blocks):
        k0, k1, k2, k3 = ks[4 * i:4 * i + 4]
        wqkv.append(s * jax.random.normal(k0, (dim, 3 * dim), jnp.float32))
        bqkv.append(0.01 * jax.random.normal(k1, (1, 3 * dim), jnp.float32))
        wo.append(s * jax.random.normal(k2, (dim, dim), jnp.float32))
        bo.append(jnp.full((1, dim), 0.01, jnp.float32))
        wl.append(s * jax.random.normal(k3, (2 * dim, dim), jnp.float32))
        bl.append(jnp.full((1, dim), 0.01, jnp.float32))
    return {"wqkv": jnp.stack(wqkv), "bqkv": jnp.stack(bqkv),
            "wo": jnp.stack(wo), "bo": jnp.stack(bo),
            "wl": jnp.stack(wl), "bl": jnp.stack(bl)}


# ----------------------------------------------------------------------------
# Pure-JAX reference (PyTorch-style formulation: per-head softmax attention,
# out-proj, concat([attn, x], -1) -> Linear -> ReLU -> sum over sequence).
# ----------------------------------------------------------------------------
def block_ref(inner, wqkv, bqkv, wo, bo, wl, bl, num_heads):
    B, S, D = inner.shape
    dh = D // num_heads
    qkv = inner @ wqkv + bqkv
    q, k, v = qkv[..., :D], qkv[..., D:2 * D], qkv[..., 2 * D:]
    qh = q.reshape(B, S, num_heads, dh).transpose(0, 2, 1, 3)
    kh = k.reshape(B, S, num_heads, dh).transpose(0, 2, 1, 3)
    vh = v.reshape(B, S, num_heads, dh).transpose(0, 2, 1, 3)
    sc = jnp.einsum("bhqd,bhkd->bhqk", qh, kh) / np.sqrt(dh)
    pa = jax.nn.softmax(sc, axis=-1)
    o = jnp.einsum("bhqk,bhkd->bhqd", pa, vh).transpose(0, 2, 1, 3).reshape(B, S, D)
    o = o @ wo + bo
    cat = jnp.concatenate([o, inner], axis=-1)
    y = jax.nn.relu(cat @ wl + bl)
    return y, y.sum(axis=1)


def hier_attn_ref(leaf, inner, root, params):
    nb = params["wqkv"].shape[0]
    for i in range(nb):
        inner, root = block_ref(inner, params["wqkv"][i], params["bqkv"][i],
                                params["wo"][i], params["bo"][i],
                                params["wl"][i], params["bl"][i], HEAD)
    return leaf, inner, root


if __name__ == "__main__":
    key = jax.random.PRNGKey(0)
    k_leaf, k_inner, k_root, k_params = jax.random.split(key, 4)

    leaf = jax.random.normal(k_leaf, (BATCH, SEQ_LEAF, DIM), jnp.float32)
    inner = jax.random.normal(k_inner, (BATCH, SEQ, DIM), jnp.float32)
    root = jax.random.normal(k_root, (BATCH, DIM), jnp.float32)

    params = init_params(k_params, DIM, NUM_BLOCKS)

    leaf_o, inner_o, root_o = hier_attn_forward(leaf, inner, root, params)
    jax.block_until_ready((leaf_o, inner_o, root_o))

    # silent correctness check against the pure-JAX reference
    _, inner_r, root_r = hier_attn_ref(leaf, inner, root, params)
    assert np.allclose(np.asarray(leaf_o), np.asarray(leaf), atol=1e-6)
    assert np.allclose(np.asarray(inner_o), np.asarray(inner_r), rtol=1e-4, atol=1e-4)
    assert np.allclose(np.asarray(root_o), np.asarray(root_r), rtol=1e-4, atol=1e-4)

    print("KERNEL_OK")
</pallas_src>

<mosaic_0001>
module attributes {stable_mosaic.version = 11 : i64} {
  func.func @hier_attn_kernel(%arg0: memref<16x32xf32, #tpu.memory_space<vmem>>, %arg1: memref<64x32xf32, #tpu.memory_space<vmem>>, %arg2: memref<16x64xf32, #tpu.memory_space<vmem>>, %arg3: memref<2x16xf32, #tpu.memory_space<vmem>>, %arg4: memref<3x32x32xf32, #tpu.memory_space<vmem>>, %arg5: memref<3x1x32xf32, #tpu.memory_space<vmem>>, %arg6: memref<3x32x32xf32, #tpu.memory_space<vmem>>, %arg7: memref<3x1x32xf32, #tpu.memory_space<vmem>>, %arg8: memref<3x32x32xf32, #tpu.memory_space<vmem>>, %arg9: memref<3x1x32xf32, #tpu.memory_space<vmem>>, %arg10: memref<3x32x32xf32, #tpu.memory_space<vmem>>, %arg11: memref<3x1x32xf32, #tpu.memory_space<vmem>>, %arg12: memref<3x32x32xf32, #tpu.memory_space<vmem>>, %arg13: memref<3x32x32xf32, #tpu.memory_space<vmem>>, %arg14: memref<3x1x32xf32, #tpu.memory_space<vmem>>, %arg15: memref<16x32xf32, #tpu.memory_space<vmem>>, %arg16: memref<2x32xf32, #tpu.memory_space<vmem>>) attributes {dimension_semantics = [], scalar_prefetch = 0 : i64, scratch_operands = 0 : i64, tpu.core_type = #tpu.core_type<tc>} {
    %c0 = arith.constant 0 : index
    %c0_0 = arith.constant 0 : index
    %0 = vector.load %arg1[%c0, %c0_0] : memref<64x32xf32, #tpu.memory_space<vmem>>, vector<64x32xf32>
    %c0_1 = arith.constant 0 : index
    %c0_2 = arith.constant 0 : index
    %1 = vector.load %arg2[%c0_1, %c0_2] : memref<16x64xf32, #tpu.memory_space<vmem>>, vector<16x64xf32>
    %c0_3 = arith.constant 0 : index
    %c0_4 = arith.constant 0 : index
    %2 = vector.load %arg3[%c0_3, %c0_4] : memref<2x16xf32, #tpu.memory_space<vmem>>, vector<2x16xf32>
    %c0_5 = arith.constant 0 : index
    %c0_6 = arith.constant 0 : index
    %3 = vector.load %arg0[%c0_5, %c0_6] : memref<16x32xf32, #tpu.memory_space<vmem>>, vector<16x32xf32>
    %c0_7 = arith.constant 0 : index
    %c0_8 = arith.constant 0 : index
    %c0_9 = arith.constant 0 : index
    %4 = vector.load %arg4[%c0_7, %c0_8, %c0_9] : memref<3x32x32xf32, #tpu.memory_space<vmem>>, vector<1x32x32xf32>
    %5 = vector.shape_cast %4 : vector<1x32x32xf32> to vector<32x32xf32>
    %cst = arith.constant dense<0.000000e+00> : vector<16x32xf32>
    %6 = tpu.matmul %3, %5, %cst {dimension_numbers = #tpu.dot_dimension_numbers<[1], [0], [0], [1], [0, 0, 1, 1], [], []>} : vector<16x32xf32>, vector<32x32xf32>, vector<16x32xf32> -> vector<16x32xf32>
    %c0_10 = arith.constant 0 : index
    %c0_11 = arith.constant 0 : index
    %c0_12 = arith.constant 0 : index
    %7 = vector.load %arg5[%c0_10, %c0_11, %c0_12] : memref<3x1x32xf32, #tpu.memory_space<vmem>>, vector<1x1x32xf32>
    %8 = vector.shape_cast %7 : vector<1x1x32xf32> to vector<1x32xf32>
    %9 = vector.broadcast %8 : vector<1x32xf32> to vector<16x32xf32>
    %10 = arith.addf %6, %9 : vector<16x32xf32>
    %c0_13 = arith.constant 0 : index
    %c0_14 = arith.constant 0 : index
    %c0_15 = arith.constant 0 : index
    %11 = vector.load %arg6[%c0_13, %c0_14, %c0_15] : memref<3x32x32xf32, #tpu.memory_space<vmem>>, vector<1x32x32xf32>
    %12 = vector.shape_cast %11 : vector<1x32x32xf32> to vector<32x32xf32>
    %cst_16 = arith.constant dense<0.000000e+00> : vector<16x32xf32>
    %13 = tpu.matmul %3, %12, %cst_16 {dimension_numbers = #tpu.dot_dimension_numbers<[1], [0], [0], [1], [0, 0, 1, 1], [], []>} : vector<16x32xf32>, vector<32x32xf32>, vector<16x32xf32> -> vector<16x32xf32>
    %c0_17 = arith.constant 0 : index
    %c0_18 = arith.constant 0 : index
    %c0_19 = arith.constant 0 : index
    %14 = vector.load %arg7[%c0_17, %c0_18, %c0_19] : memref<3x1x32xf32, #tpu.memory_space<vmem>>, vector<1x1x32xf32>
    %15 = vector.shape_cast %14 : vector<1x1x32xf32> to vector<1x32xf32>
    %16 = vector.broadcast %15 : vector<1x32xf32> to vector<16x32xf32>
    %17 = arith.addf %13, %16 : vector<16x32xf32>
    %c0_20 = arith.constant 0 : index
    %c0_21 = arith.constant 0 : index
    %c0_22 = arith.constant 0 : index
    %18 = vector.load %arg8[%c0_20, %c0_21, %c0_22] : memref<3x32x32xf32, #tpu.memory_space<vmem>>, vector<1x32x32xf32>
    %19 = vector.shape_cast %18 : vector<1x32x32xf32> to vector<32x32xf32>
    %cst_23 = arith.constant dense<0.000000e+00> : vector<16x32xf32>
    %20 = tpu.matmul %3, %19, %cst_23 {dimension_numbers = #tpu.dot_dimension_numbers<[1], [0], [0], [1], [0, 0, 1, 1], [], []>} : vector<16x32xf32>, vector<32x32xf32>, vector<16x32xf32> -> vector<16x32xf32>
    %c0_24 = arith.constant 0 : index
    %c0_25 = arith.constant 0 : index
    %c0_26 = arith.constant 0 : index
    %21 = vector.load %arg9[%c0_24, %c0_25, %c0_26] : memref<3x1x32xf32, #tpu.memory_space<vmem>>, vector<1x1x32xf32>
    %22 = vector.shape_cast %21 : vector<1x1x32xf32> to vector<1x32xf32>
    %23 = vector.broadcast %22 : vector<1x32xf32> to vector<16x32xf32>
    %24 = arith.addf %20, %23 : vector<16x32xf32>
    %25 = vector.shape_cast %17 : vector<16x32xf32> to vector<1x16x32xf32>
    %26 = vector.shape_cast %25 : vector<1x16x32xf32> to vector<1x16x32xf32>
    %27 = vector.broadcast %26 : vector<1x16x32xf32> to vector<4x16x32xf32>
    %28 = vector.shape_cast %27 : vector<4x16x32xf32> to vector<64x32xf32>
    %29 = arith.mulf %28, %0 : vector<64x32xf32>
    %30 = vector.shape_cast %24 : vector<16x32xf32> to vector<1x16x32xf32>
    %31 = vector.shape_cast %30 : vector<1x16x32xf32> to vector<1x16x32xf32>
    %32 = vector.broadcast %31 : vector<1x16x32xf32> to vector<4x16x32xf32>
    %33 = vector.shape_cast %32 : vector<4x16x32xf32> to vector<64x32xf32>
    %34 = arith.mulf %33, %0 : vector<64x32xf32>
    "tpu.trace_start"() <{level = 10 : i32, message = "sd,td->st"}> : () -> ()
    %cst_27 = arith.constant dense<0.000000e+00> : vector<16x64xf32>
    %35 = tpu.matmul %10, %29, %cst_27 {dimension_numbers = #tpu.dot_dimension_numbers<[1], [1], [0], [0], [0, 0, 1, 0], [], []>} : vector<16x32xf32>, vector<64x32xf32>, vector<16x64xf32> -> vector<16x64xf32>
    "tpu.trace_stop"() : () -> ()
    %36 = arith.addf %35, %1 : vector<16x64xf32>
    %cst_28 = arith.constant dense<0xFF800000> : vector<16xf32>
    %37 = vector.multi_reduction <maximumf>, %36, %cst_28 [1] : vector<16x64xf32> to vector<16xf32>
    %38 = vector.shape_cast %37 : vector<16xf32> to vector<16x1xf32>
    %39 = vector.broadcast %38 : vector<16x1xf32> to vector<16x64xf32>
    %40 = arith.subf %36, %39 : vector<16x64xf32>
    %41 = math.exp %40 : vector<16x64xf32>
    %cst_29 = arith.constant dense<0.000000e+00> : vector<16x32xf32>
    %42 = tpu.matmul %41, %0, %cst_29 {dimension_numbers = #tpu.dot_dimension_numbers<[1], [0], [0], [1], [0, 0, 1, 1], [], []>} : vector<16x64xf32>, vector<64x32xf32>, vector<16x32xf32> -> vector<16x32xf32>
    %cst_30 = arith.constant dense<0.000000e+00> : vector<16x32xf32>
    %43 = tpu.matmul %41, %34, %cst_30 {dimension_numbers = #tpu.dot_dimension_numbers<[1], [0], [0], [1], [0, 0, 1, 1], [], []>} : vector<16x64xf32>, vector<64x32xf32>, vector<16x32xf32> -> vector<16x32xf32>
    %44 = tpu.reciprocal %42 {approx = true} : vector<16x32xf32> -> vector<16x32xf32>
    %45 = arith.mulf %42, %44 : vector<16x32xf32>
    %cst_31 = arith.constant 2.000000e+00 : f32
    %46 = vector.broadcast %cst_31 : f32 to vector<16x32xf32>
    %47 = arith.subf %46, %45 : vector<16x32xf32>
    %48 = arith.mulf %44, %47 : vector<16x32xf32>
    %49 = arith.mulf %43, %48 : vector<16x32xf32>
    %c0_32 = arith.constant 0 : index
    %c0_33 = arith.constant 0 : index
    %c0_34 = arith.constant 0 : index
    %50 = vector.load %arg10[%c0_32, %c0_33, %c0_34] : memref<3x32x32xf32, #tpu.memory_space<vmem>>, vector<1x32x32xf32>
    %51 = vector.shape_cast %50 : vector<1x32x32xf32> to vector<32x32xf32>
    %cst_35 = arith.constant dense<0.000000e+00> : vector<16x32xf32>
    %52 = tpu.matmul %49, %51, %cst_35 {dimension_numbers = #tpu.dot_dimension_numbers<[1], [0], [0], [1], [0, 0, 1, 1], [], []>} : vector<16x32xf32>, vector<32x32xf32>, vector<16x32xf32> -> vector<16x32xf32>
    %c0_36 = arith.constant 0 : index
    %c0_37 = arith.constant 0 : index
    %c0_38 = arith.constant 0 : index
    %53 = vector.load %arg11[%c0_36, %c0_37, %c0_38] : memref<3x1x32xf32, #tpu.memory_space<vmem>>, vector<1x1x32xf32>
    %54 = vector.shape_cast %53 : vector<1x1x32xf32> to vector<1x32xf32>
    %55 = vector.broadcast %54 : vector<1x32xf32> to vector<16x32xf32>
    %56 = arith.addf %52, %55 : vector<16x32xf32>
    %c0_39 = arith.constant 0 : index
    %c0_40 = arith.constant 0 : index
    %c0_41 = arith.constant 0 : index
    %57 = vector.load %arg12[%c0_39, %c0_40, %c0_41] : memref<3x32x32xf32, #tpu.memory_space<vmem>>, vector<1x32x32xf32>
    %58 = vector.shape_cast %57 : vector<1x32x32xf32> to vector<32x32xf32>
    %cst_42 = arith.constant dense<0.000000e+00> : vector<16x32xf32>
    %59 = tpu.matmul %56, %58, %cst_42 {dimension_numbers = #tpu.dot_dimension_numbers<[1], [0], [0], [1], [0, 0, 1, 1], [], []>} : vector<16x32xf32>, vector<32x32xf32>, vector<16x32xf32> -> vector<16x32xf32>
    %c0_43 = arith.constant 0 : index
    %c0_44 = arith.constant 0 : index
    %c0_45 = arith.constant 0 : index
    %60 = vector.load %arg13[%c0_43, %c0_44, %c0_45] : memref<3x32x32xf32, #tpu.memory_space<vmem>>, vector<1x32x32xf32>
    %61 = vector.shape_cast %60 : vector<1x32x32xf32> to vector<32x32xf32>
    %cst_46 = arith.constant dense<0.000000e+00> : vector<16x32xf32>
    %62 = tpu.matmul %3, %61, %cst_46 {dimension_numbers = #tpu.dot_dimension_numbers<[1], [0], [0], [1], [0, 0, 1, 1], [], []>} : vector<16x32xf32>, vector<32x32xf32>, vector<16x32xf32> -> vector<16x32xf32>
    %63 = arith.addf %59, %62 : vector<16x32xf32>
    %c0_47 = arith.constant 0 : index
    %c0_48 = arith.constant 0 : index
    %c0_49 = arith.constant 0 : index
    %64 = vector.load %arg14[%c0_47, %c0_48, %c0_49] : memref<3x1x32xf32, #tpu.memory_space<vmem>>, vector<1x1x32xf32>
    %65 = vector.shape_cast %64 : vector<1x1x32xf32> to vector<1x32xf32>
    %66 = vector.broadcast %65 : vector<1x32xf32> to vector<16x32xf32>
    %67 = arith.addf %63, %66 : vector<16x32xf32>
    %cst_50 = arith.constant 0.000000e+00 : f32
    %68 = vector.broadcast %cst_50 : f32 to vector<16x32xf32>
    %69 = arith.maximumf %67, %68 : vector<16x32xf32>
    %c1 = arith.constant 1 : index
    %c0_51 = arith.constant 0 : index
    %c0_52 = arith.constant 0 : index
    %70 = vector.load %arg4[%c1, %c0_51, %c0_52] : memref<3x32x32xf32, #tpu.memory_space<vmem>>, vector<1x32x32xf32>
    %71 = vector.shape_cast %70 : vector<1x32x32xf32> to vector<32x32xf32>
    %cst_53 = arith.constant dense<0.000000e+00> : vector<16x32xf32>
    %72 = tpu.matmul %69, %71, %cst_53 {dimension_numbers = #tpu.dot_dimension_numbers<[1], [0], [0], [1], [0, 0, 1, 1], [], []>} : vector<16x32xf32>, vector<32x32xf32>, vector<16x32xf32> -> vector<16x32xf32>
    %c1_54 = arith.constant 1 : index
    %c0_55 = arith.constant 0 : index
    %c0_56 = arith.constant 0 : index
    %73 = vector.load %arg5[%c1_54, %c0_55, %c0_56] : memref<3x1x32xf32, #tpu.memory_space<vmem>>, vector<1x1x32xf32>
    %74 = vector.shape_cast %73 : vector<1x1x32xf32> to vector<1x32xf32>
    %75 = vector.broadcast %74 : vector<1x32xf32> to vector<16x32xf32>
    %76 = arith.addf %72, %75 : vector<16x32xf32>
    %c1_57 = arith.constant 1 : index
    %c0_58 = arith.constant 0 : index
    %c0_59 = arith.constant 0 : index
    %77 = vector.load %arg6[%c1_57, %c0_58, %c0_59] : memref<3x32x32xf32, #tpu.memory_space<vmem>>, vector<1x32x32xf32>
    %78 = vector.shape_cast %77 : vector<1x32x32xf32> to vector<32x32xf32>
    %cst_60 = arith.constant dense<0.000000e+00> : vector<16x32xf32>
    %79 = tpu.matmul %69, %78, %cst_60 {dimension_numbers = #tpu.dot_dimension_numbers<[1], [0], [0], [1], [0, 0, 1, 1], [], []>} : vector<16x32xf32>, vector<32x32xf32>, vector<16x32xf32> -> vector<16x32xf32>
    %c1_61 = arith.constant 1 : index
    %c0_62 = arith.constant 0 : index
    %c0_63 = arith.constant 0 : index
    %80 = vector.load %arg7[%c1_61, %c0_62, %c0_63] : memref<3x1x32xf32, #tpu.memory_space<vmem>>, vector<1x1x32xf32>
    %81 = vector.shape_cast %80 : vector<1x1x32xf32> to vector<1x32xf32>
    %82 = vector.broadcast %81 : vector<1x32xf32> to vector<16x32xf32>
    %83 = arith.addf %79, %82 : vector<16x32xf32>
    %c1_64 = arith.constant 1 : index
    %c0_65 = arith.constant 0 : index
    %c0_66 = arith.constant 0 : index
    %84 = vector.load %arg8[%c1_64, %c0_65, %c0_66] : memref<3x32x32xf32, #tpu.memory_space<vmem>>, vector<1x32x32xf32>
    %85 = vector.shape_cast %84 : vector<1x32x32xf32> to vector<32x32xf32>
    %cst_67 = arith.constant dense<0.000000e+00> : vector<16x32xf32>
    %86 = tpu.matmul %69, %85, %cst_67 {dimension_numbers = #tpu.dot_dimension_numbers<[1], [0], [0], [1], [0, 0, 1, 1], [], []>} : vector<16x32xf32>, vector<32x32xf32>, vector<16x32xf32> -> vector<16x32xf32>
    %c1_68 = arith.constant 1 : index
    %c0_69 = arith.constant 0 : index
    %c0_70 = arith.constant 0 : index
    %87 = vector.load %arg9[%c1_68, %c0_69, %c0_70] : memref<3x1x32xf32, #tpu.memory_space<vmem>>, vector<1x1x32xf32>
    %88 = vector.shape_cast %87 : vector<1x1x32xf32> to vector<1x32xf32>
    %89 = vector.broadcast %88 : vector<1x32xf32> to vector<16x32xf32>
    %90 = arith.addf %86, %89 : vector<16x32xf32>
    %91 = vector.shape_cast %83 : vector<16x32xf32> to vector<1x16x32xf32>
    %92 = vector.shape_cast %91 : vector<1x16x32xf32> to vector<1x16x32xf32>
    %93 = vector.broadcast %92 : vector<1x16x32xf32> to vector<4x16x32xf32>
    %94 = vector.shape_cast %93 : vector<4x16x32xf32> to vector<64x32xf32>
    %95 = arith.mulf %94, %0 : vector<64x32xf32>
    %96 = vector.shape_cast %90 : vector<16x32xf32> to vector<1x16x32xf32>
    %97 = vector.shape_cast %96 : vector<1x16x32xf32> to vector<1x16x32xf32>
    %98 = vector.broadcast %97 : vector<1x16x32xf32> to vector<4x16x32xf32>
    %99 = vector.shape_cast %98 : vector<4x16x32xf32> to vector<64x32xf32>
    %100 = arith.mulf %99, %0 : vector<64x32xf32>
    "tpu.trace_start"() <{level = 10 : i32, message = "sd,td->st"}> : () -> ()
    %cst_71 = arith.constant dense<0.000000e+00> : vector<16x64xf32>
    %101 = tpu.matmul %76, %95, %cst_71 {dimension_numbers = #tpu.dot_dimension_numbers<[1], [1], [0], [0], [0, 0, 1, 0], [], []>} : vector<16x32xf32>, vector<64x32xf32>, vector<16x64xf32> -> vector<16x64xf32>
    "tpu.trace_stop"() : () -> ()
    %102 = arith.addf %101, %1 : vector<16x64xf32>
    %cst_72 = arith.constant dense<0xFF800000> : vector<16xf32>
    %103 = vector.multi_reduction <maximumf>, %102, %cst_72 [1] : vector<16x64xf32> to vector<16xf32>
    %104 = vector.shape_cast %103 : vector<16xf32> to vector<16x1xf32>
    %105 = vector.broadcast %104 : vector<16x1xf32> to vector<16x64xf32>
    %106 = arith.subf %102, %105 : vector<16x64xf32>
    %107 = math.exp %106 : vector<16x64xf32>
    %cst_73 = arith.constant dense<0.000000e+00> : vector<16x32xf32>
    %108 = tpu.matmul %107, %0, %cst_73 {dimension_numbers = #tpu.dot_dimension_numbers<[1], [0], [0], [1], [0, 0, 1, 1], [], []>} : vector<16x64xf32>, vector<64x32xf32>, vector<16x32xf32> -> vector<16x32xf32>
    %cst_74 = arith.constant dense<0.000000e+00> : vector<16x32xf32>
    %109 = tpu.matmul %107, %100, %cst_74 {dimension_numbers = #tpu.dot_dimension_numbers<[1], [0], [0], [1], [0, 0, 1, 1], [], []>} : vector<16x64xf32>, vector<64x32xf32>, vector<16x32xf32> -> vector<16x32xf32>
    %110 = tpu.reciprocal %108 {approx = true} : vector<16x32xf32> -> vector<16x32xf32>
    %111 = arith.mulf %108, %110 : vector<16x32xf32>
    %cst_75 = arith.constant 2.000000e+00 : f32
    %112 = vector.broadcast %cst_75 : f32 to vector<16x32xf32>
    %113 = arith.subf %112, %111 : vector<16x32xf32>
    %114 = arith.mulf %110, %113 : vector<16x32xf32>
    %115 = arith.mulf %109, %114 : vector<16x32xf32>
    %c1_76 = arith.constant 1 : index
    %c0_77 = arith.constant 0 : index
    %c0_78 = arith.constant 0 : index
    %116 = vector.load %arg10[%c1_76, %c0_77, %c0_78] : memref<3x32x32xf32, #tpu.memory_space<vmem>>, vector<1x32x32xf32>
    %117 = vector.shape_cast %116 : vector<1x32x32xf32> to vector<32x32xf32>
    %cst_79 = arith.constant dense<0.000000e+00> : vector<16x32xf32>
    %118 = tpu.matmul %115, %117, %cst_79 {dimension_numbers = #tpu.dot_dimension_numbers<[1], [0], [0], [1], [0, 0, 1, 1], [], []>} : vector<16x32xf32>, vector<32x32xf32>, vector<16x32xf32> -> vector<16x32xf32>
    %c1_80 = arith.constant 1 : index
    %c0_81 = arith.constant 0 : index
    %c0_82 = arith.constant 0 : index
    %119 = vector.load %arg11[%c1_80, %c0_81, %c0_82] : memref<3x1x32xf32, #tpu.memory_space<vmem>>, vector<1x1x32xf32>
    %120 = vector.shape_cast %119 : vector<1x1x32xf32> to vector<1x32xf32>
    %121 = vector.broadcast %120 : vector<1x32xf32> to vector<16x32xf32>
    %122 = arith.addf %118, %121 : vector<16x32xf32>
    %c1_83 = arith.constant 1 : index
    %c0_84 = arith.constant 0 : index
    %c0_85 = arith.constant 0 : index
    %123 = vector.load %arg12[%c1_83, %c0_84, %c0_85] : memref<3x32x32xf32, #tpu.memory_space<vmem>>, vector<1x32x32xf32>
    %124 = vector.shape_cast %123 : vector<1x32x32xf32> to vector<32x32xf32>
    %cst_86 = arith.constant dense<0.000000e+00> : vector<16x32xf32>
    %125 = tpu.matmul %122, %124, %cst_86 {dimension_numbers = #tpu.dot_dimension_numbers<[1], [0], [0], [1], [0, 0, 1, 1], [], []>} : vector<16x32xf32>, vector<32x32xf32>, vector<16x32xf32> -> vector<16x32xf32>
    %c1_87 = arith.constant 1 : index
    %c0_88 = arith.constant 0 : index
    %c0_89 = arith.constant 0 : index
    %126 = vector.load %arg13[%c1_87, %c0_88, %c0_89] : memref<3x32x32xf32, #tpu.memory_space<vmem>>, vector<1x32x32xf32>
    %127 = vector.shape_cast %126 : vector<1x32x32xf32> to vector<32x32xf32>
    %cst_90 = arith.constant dense<0.000000e+00> : vector<16x32xf32>
    %128 = tpu.matmul %69, %127, %cst_90 {dimension_numbers = #tpu.dot_dimension_numbers<[1], [0], [0], [1], [0, 0, 1, 1], [], []>} : vector<16x32xf32>, vector<32x32xf32>, vector<16x32xf32> -> vector<16x32xf32>
    %129 = arith.addf %125, %128 : vector<16x32xf32>
    %c1_91 = arith.constant 1 : index
    %c0_92 = arith.constant 0 : index
    %c0_93 = arith.constant 0 : index
    %130 = vector.load %arg14[%c1_91, %c0_92, %c0_93] : memref<3x1x32xf32, #tpu.memory_space<vmem>>, vector<1x1x32xf32>
    %131 = vector.shape_cast %130 : vector<1x1x32xf32> to vector<1x32xf32>
    %132 = vector.broadcast %131 : vector<1x32xf32> to vector<16x32xf32>
    %133 = arith.addf %129, %132 : vector<16x32xf32>
    %cst_94 = arith.constant 0.000000e+00 : f32
    %134 = vector.broadcast %cst_94 : f32 to vector<16x32xf32>
    %135 = arith.maximumf %133, %134 : vector<16x32xf32>
    %c2 = arith.constant 2 : index
    %c0_95 = arith.constant 0 : index
    %c0_96 = arith.constant 0 : index
    %136 = vector.load %arg4[%c2, %c0_95, %c0_96] : memref<3x32x32xf32, #tpu.memory_space<vmem>>, vector<1x32x32xf32>
    %137 = vector.shape_cast %136 : vector<1x32x32xf32> to vector<32x32xf32>
    %cst_97 = arith.constant dense<0.000000e+00> : vector<16x32xf32>
    %138 = tpu.matmul %135, %137, %cst_97 {dimension_numbers = #tpu.dot_dimension_numbers<[1], [0], [0], [1], [0, 0, 1, 1], [], []>} : vector<16x32xf32>, vector<32x32xf32>, vector<16x32xf32> -> vector<16x32xf32>
    %c2_98 = arith.constant 2 : index
    %c0_99 = arith.constant 0 : index
    %c0_100 = arith.constant 0 : index
    %139 = vector.load %arg5[%c2_98, %c0_99, %c0_100] : memref<3x1x32xf32, #tpu.memory_space<vmem>>, vector<1x1x32xf32>
    %140 = vector.shape_cast %139 : vector<1x1x32xf32> to vector<1x32xf32>
    %141 = vector.broadcast %140 : vector<1x32xf32> to vector<16x32xf32>
    %142 = arith.addf %138, %141 : vector<16x32xf32>
    %c2_101 = arith.constant 2 : index
    %c0_102 = arith.constant 0 : index
    %c0_103 = arith.constant 0 : index
    %143 = vector.load %arg6[%c2_101, %c0_102, %c0_103] : memref<3x32x32xf32, #tpu.memory_space<vmem>>, vector<1x32x32xf32>
    %144 = vector.shape_cast %143 : vector<1x32x32xf32> to vector<32x32xf32>
    %cst_104 = arith.constant dense<0.000000e+00> : vector<16x32xf32>
    %145 = tpu.matmul %135, %144, %cst_104 {dimension_numbers = #tpu.dot_dimension_numbers<[1], [0], [0], [1], [0, 0, 1, 1], [], []>} : vector<16x32xf32>, vector<32x32xf32>, vector<16x32xf32> -> vector<16x32xf32>
    %c2_105 = arith.constant 2 : index
    %c0_106 = arith.constant 0 : index
    %c0_107 = arith.constant 0 : index
    %146 = vector.load %arg7[%c2_105, %c0_106, %c0_107] : memref<3x1x32xf32, #tpu.memory_space<vmem>>, vector<1x1x32xf32>
    %147 = vector.shape_cast %146 : vector<1x1x32xf32> to vector<1x32xf32>
    %148 = vector.broadcast %147 : vector<1x32xf32> to vector<16x32xf32>
    %149 = arith.addf %145, %148 : vector<16x32xf32>
    %c2_108 = arith.constant 2 : index
    %c0_109 = arith.constant 0 : index
    %c0_110 = arith.constant 0 : index
    %150 = vector.load %arg8[%c2_108, %c0_109, %c0_110] : memref<3x32x32xf32, #tpu.memory_space<vmem>>, vector<1x32x32xf32>
    %151 = vector.shape_cast %150 : vector<1x32x32xf32> to vector<32x32xf32>
    %cst_111 = arith.constant dense<0.000000e+00> : vector<16x32xf32>
    %152 = tpu.matmul %135, %151, %cst_111 {dimension_numbers = #tpu.dot_dimension_numbers<[1], [0], [0], [1], [0, 0, 1, 1], [], []>} : vector<16x32xf32>, vector<32x32xf32>, vector<16x32xf32> -> vector<16x32xf32>
    %c2_112 = arith.constant 2 : index
    %c0_113 = arith.constant 0 : index
    %c0_114 = arith.constant 0 : index
    %153 = vector.load %arg9[%c2_112, %c0_113, %c0_114] : memref<3x1x32xf32, #tpu.memory_space<vmem>>, vector<1x1x32xf32>
    %154 = vector.shape_cast %153 : vector<1x1x32xf32> to vector<1x32xf32>
    %155 = vector.broadcast %154 : vector<1x32xf32> to vector<16x32xf32>
    %156 = arith.addf %152, %155 : vector<16x32xf32>
    %157 = vector.shape_cast %149 : vector<16x32xf32> to vector<1x16x32xf32>
    %158 = vector.shape_cast %157 : vector<1x16x32xf32> to vector<1x16x32xf32>
    %159 = vector.broadcast %158 : vector<1x16x32xf32> to vector<4x16x32xf32>
    %160 = vector.shape_cast %159 : vector<4x16x32xf32> to vector<64x32xf32>
    %161 = arith.mulf %160, %0 : vector<64x32xf32>
    %162 = vector.shape_cast %156 : vector<16x32xf32> to vector<1x16x32xf32>
    %163 = vector.shape_cast %162 : vector<1x16x32xf32> to vector<1x16x32xf32>
    %164 = vector.broadcast %163 : vector<1x16x32xf32> to vector<4x16x32xf32>
    %165 = vector.shape_cast %164 : vector<4x16x32xf32> to vector<64x32xf32>
    %166 = arith.mulf %165, %0 : vector<64x32xf32>
    "tpu.trace_start"() <{level = 10 : i32, message = "sd,td->st"}> : () -> ()
    %cst_115 = arith.constant dense<0.000000e+00> : vector<16x64xf32>
    %167 = tpu.matmul %142, %161, %cst_115 {dimension_numbers = #tpu.dot_dimension_numbers<[1], [1], [0], [0], [0, 0, 1, 0], [], []>} : vector<16x32xf32>, vector<64x32xf32>, vector<16x64xf32> -> vector<16x64xf32>
    "tpu.trace_stop"() : () -> ()
    %168 = arith.addf %167, %1 : vector<16x64xf32>
    %cst_116 = arith.constant dense<0xFF800000> : vector<16xf32>
    %169 = vector.multi_reduction <maximumf>, %168, %cst_116 [1] : vector<16x64xf32> to vector<16xf32>
    %170 = vector.shape_cast %169 : vector<16xf32> to vector<16x1xf32>
    %171 = vector.broadcast %170 : vector<16x1xf32> to vector<16x64xf32>
    %172 = arith.subf %168, %171 : vector<16x64xf32>
    %173 = math.exp %172 : vector<16x64xf32>
    %cst_117 = arith.constant dense<0.000000e+00> : vector<16x32xf32>
    %174 = tpu.matmul %173, %0, %cst_117 {dimension_numbers = #tpu.dot_dimension_numbers<[1], [0], [0], [1], [0, 0, 1, 1], [], []>} : vector<16x64xf32>, vector<64x32xf32>, vector<16x32xf32> -> vector<16x32xf32>
    %cst_118 = arith.constant dense<0.000000e+00> : vector<16x32xf32>
    %175 = tpu.matmul %173, %166, %cst_118 {dimension_numbers = #tpu.dot_dimension_numbers<[1], [0], [0], [1], [0, 0, 1, 1], [], []>} : vector<16x64xf32>, vector<64x32xf32>, vector<16x32xf32> -> vector<16x32xf32>
    %176 = tpu.reciprocal %174 {approx = true} : vector<16x32xf32> -> vector<16x32xf32>
    %177 = arith.mulf %174, %176 : vector<16x32xf32>
    %cst_119 = arith.constant 2.000000e+00 : f32
    %178 = vector.broadcast %cst_119 : f32 to vector<16x32xf32>
    %179 = arith.subf %178, %177 : vector<16x32xf32>
    %180 = arith.mulf %176, %179 : vector<16x32xf32>
    %181 = arith.mulf %175, %180 : vector<16x32xf32>
    %c2_120 = arith.constant 2 : index
    %c0_121 = arith.constant 0 : index
    %c0_122 = arith.constant 0 : index
    %182 = vector.load %arg10[%c2_120, %c0_121, %c0_122] : memref<3x32x32xf32, #tpu.memory_space<vmem>>, vector<1x32x32xf32>
    %183 = vector.shape_cast %182 : vector<1x32x32xf32> to vector<32x32xf32>
    %cst_123 = arith.constant dense<0.000000e+00> : vector<16x32xf32>
    %184 = tpu.matmul %181, %183, %cst_123 {dimension_numbers = #tpu.dot_dimension_numbers<[1], [0], [0], [1], [0, 0, 1, 1], [], []>} : vector<16x32xf32>, vector<32x32xf32>, vector<16x32xf32> -> vector<16x32xf32>
    %c2_124 = arith.constant 2 : index
    %c0_125 = arith.constant 0 : index
    %c0_126 = arith.constant 0 : index
    %185 = vector.load %arg11[%c2_124, %c0_125, %c0_126] : memref<3x1x32xf32, #tpu.memory_space<vmem>>, vector<1x1x32xf32>
    %186 = vector.shape_cast %185 : vector<1x1x32xf32> to vector<1x32xf32>
    %187 = vector.broadcast %186 : vector<1x32xf32> to vector<16x32xf32>
    %188 = arith.addf %184, %187 : vector<16x32xf32>
    %c2_127 = arith.constant 2 : index
    %c0_128 = arith.constant 0 : index
    %c0_129 = arith.constant 0 : index
    %189 = vector.load %arg12[%c2_127, %c0_128, %c0_129] : memref<3x32x32xf32, #tpu.memory_space<vmem>>, vector<1x32x32xf32>
    %190 = vector.shape_cast %189 : vector<1x32x32xf32> to vector<32x32xf32>
    %cst_130 = arith.constant dense<0.000000e+00> : vector<16x32xf32>
    %191 = tpu.matmul %188, %190, %cst_130 {dimension_numbers = #tpu.dot_dimension_numbers<[1], [0], [0], [1], [0, 0, 1, 1], [], []>} : vector<16x32xf32>, vector<32x32xf32>, vector<16x32xf32> -> vector<16x32xf32>
    %c2_131 = arith.constant 2 : index
    %c0_132 = arith.constant 0 : index
    %c0_133 = arith.constant 0 : index
    %192 = vector.load %arg13[%c2_131, %c0_132, %c0_133] : memref<3x32x32xf32, #tpu.memory_space<vmem>>, vector<1x32x32xf32>
    %193 = vector.shape_cast %192 : vector<1x32x32xf32> to vector<32x32xf32>
    %cst_134 = arith.constant dense<0.000000e+00> : vector<16x32xf32>
    %194 = tpu.matmul %135, %193, %cst_134 {dimension_numbers = #tpu.dot_dimension_numbers<[1], [0], [0], [1], [0, 0, 1, 1], [], []>} : vector<16x32xf32>, vector<32x32xf32>, vector<16x32xf32> -> vector<16x32xf32>
    %195 = arith.addf %191, %194 : vector<16x32xf32>
    %c2_135 = arith.constant 2 : index
    %c0_136 = arith.constant 0 : index
    %c0_137 = arith.constant 0 : index
    %196 = vector.load %arg14[%c2_135, %c0_136, %c0_137] : memref<3x1x32xf32, #tpu.memory_space<vmem>>, vector<1x1x32xf32>
    %197 = vector.shape_cast %196 : vector<1x1x32xf32> to vector<1x32xf32>
    %198 = vector.broadcast %197 : vector<1x32xf32> to vector<16x32xf32>
    %199 = arith.addf %195, %198 : vector<16x32xf32>
    %cst_138 = arith.constant 0.000000e+00 : f32
    %200 = vector.broadcast %cst_138 : f32 to vector<16x32xf32>
    %201 = arith.maximumf %199, %200 : vector<16x32xf32>
    %c0_139 = arith.constant 0 : index
    %c0_140 = arith.constant 0 : index
    %202 = vector.load %arg15[%c0_139, %c0_140] : memref<16x32xf32, #tpu.memory_space<vmem>>, vector<16x32xf32>
    tpu.vector_store %arg15[%c0_139, %c0_140], %201 {strides = array<i32>} : memref<16x32xf32, #tpu.memory_space<vmem>>, vector<16x32xf32>,
    %cst_141 = arith.constant dense<0.000000e+00> : vector<2x32xf32>
    %203 = tpu.matmul %2, %201, %cst_141 {dimension_numbers = #tpu.dot_dimension_numbers<[1], [0], [0], [1], [0, 0, 1, 1], [], []>} : vector<2x16xf32>, vector<16x32xf32>, vector<2x32xf32> -> vector<2x32xf32>
    %c0_142 = arith.constant 0 : index
    %c0_143 = arith.constant 0 : index
    %204 = vector.load %arg16[%c0_142, %c0_143] : memref<2x32xf32, #tpu.memory_space<vmem>>, vector<2x32xf32>
    tpu.vector_store %arg16[%c0_142, %c0_143], %203 {strides = array<i32>} : memref<2x32xf32, #tpu.memory_space<vmem>>, vector<2x32xf32>,
    return
  }
}

</mosaic_0001>

<bundles_post_ra>
// kernel: hier_attn_forward.1
= control target key start
LH: loop header
LB: loop body
LE: loop exit
PB: predicated region body
PF: predicated region fallthrough
CT: control target
= control target key end

     0   :  { %s2041_s0 = inlined_call_operand.vmem [shape: f32[16,32], index: 0, kind: input, shape index: {}]   ;;  %s2042_s1 = inlined_call_operand.vmem [shape: f32[64,32], index: 1, kind: input, shape index: {}]   ;;  %s2043_s2 = inlined_call_operand.vmem [shape: f32[16,64], index: 2, kind: input, shape index: {}]   ;;  %s2044_s3 = inlined_call_operand.vmem [shape: f32[2,16], index: 3, kind: input, shape index: {}]   ;;  %s2045_s4 = inlined_call_operand.vmem [shape: f32[3,32,32], index: 4, kind: input, shape index: {}]   ;;  %s2046_s5 = inlined_call_operand.vmem [shape: f32[3,1,32], index: 5, kind: input, shape index: {}]   ;;  %s2047_s6 = inlined_call_operand.vmem [shape: f32[3,32,32], index: 6, kind: input, shape index: {}]   ;;  %s2048_s7 = inlined_call_operand.vmem [shape: f32[3,1,32], index: 7, kind: input, shape index: {}]   ;;  %s2049_s8 = inlined_call_operand.vmem [shape: f32[3,32,32], index: 8, kind: input, shape index: {}]   ;;  %s2050_s9 = inlined_call_operand.vmem [shape: f32[3,1,32], index: 9, kind: input, shape index: {}]   ;;  %s2051_s10 = inlined_call_operand.vmem [shape: f32[3,32,32], index: 10, kind: input, shape index: {}]   ;;  %s2052_s11 = inlined_call_operand.vmem [shape: f32[3,1,32], index: 11, kind: input, shape index: {}]   ;;  %s2053_s12 = inlined_call_operand.vmem [shape: f32[3,32,32], index: 12, kind: input, shape index: {}]   ;;  %s2054_s13 = inlined_call_operand.vmem [shape: f32[3,32,32], index: 13, kind: input, shape index: {}]   ;;  %s2055_s14 = inlined_call_operand.vmem [shape: f32[3,1,32], index: 14, kind: input, shape index: {}]   ;;  %s2056_s15 = inlined_call_operand.hbm [shape: f32[16,32], index: 15, kind: output, shape index: {0}]   ;;  %s2057_s16 = inlined_call_operand.hbm [shape: f32[2,32], index: 16, kind: output, shape index: {1}]  }
   0x1   :  { %2059 = sst [smem:[#allocation8_spill]] %s2041_s0 }
   0x2   :  { %22 = vsyncpa [#allocation3], 0  ;;  %v108_v0 = vld [vmem:[%s2047_s6 + $0x18] sm:$0xff]  ;;  %v107_v1 = vld [vmem:[%s2047_s6 + $0x10] sm:$0xff]  ;;  %s2060_s20 = sld [smem:[#allocation8_spill]]  ;;  %vm75_vm0 = vcmask 261120  }
   0x3   :  { %125 = vmatpush.msra.mxu1 %v108_v0  ;;  %v106_v2 = vld [vmem:[%s2047_s6 + $0x8] sm:$0xff]  ;;  %v105_v3 = vld [vmem:[%s2047_s6] sm:$0xff]  ;;  %v70_v4 = vld [vmem:[%s2045_s4 + $0x18] sm:$0xff] }
   0x4   :  { %v69_v5 = vld [vmem:[%s2045_s4 + $0x10] sm:$0xff]  ;;  %94 = vmatpush.msra.mxu0 %v70_v4  ;;  %v68_v7 = vld [vmem:[%s2045_s4 + $0x8] sm:$0xff]  ;;  %v67_v8 = vld [vmem:[%s2045_s4] sm:$0xff] }
   0x5   :  { %126 = vmatpush.msra.mxu1 %v107_v1 }
   0x6   :  { %95 = vmatpush.msra.mxu0 %v69_v5 }
   0x7   :  { %127 = vmatpush.msra.mxu1 %v106_v2 }
   0x8   :  { %v1536_v6 = vld [vmem:[%s2060_s20] sm:$0xff]  ;;  %96 = vmatpush.msra.mxu0 %v68_v7 }
   0x9   :  { %128 = vmatpush.msra.mxu1 %v105_v3 }
   0xa   :  { %1196 = vmatmul.msk.f32.vlgmr.msra.gmra.mxu1 %vm75_vm0, %v1536_v6 }
   0xb   :  { %23 = vsyncpa [#allocation5], 0  ;;  %97 = vmatpush.msra.mxu0 %v67_v8  ;;  %v1551_v9 = vld [vmem:[%s2060_s20 + $0x8] sm:$0xff]  ;;  %v1560_v10 = vld [vmem:[%s2042_s1 + $0x38] sm:$0xff]  ;;  %vm236_vm1 = vcmask 523264   ;;  %vm1134_vm2 = vcmask 130048  }
   0xc   :  { %1194 = vmatmul.msk.f32.vlgmr.msra.gmra.mxu0 %vm75_vm0, %v1536_v6  ;;  %v1566_v11 = vld [vmem:[%s2042_s1 + $0x30] sm:$0xff]  ;;  %v1572_v12 = vld [vmem:[%s2042_s1 + $0x28] sm:$0xff]  ;;  %v1578_v13 = vld [vmem:[%s2042_s1 + $0x20] sm:$0xff]  ;;  %s1166_s27 = sshll.u32 %s2056_s15, 4  ;;  %s1427_s28 = smov 128   ;;  %vm1158_vm3 = vcmask 254976   ;;  %s1167_s27 = int_to_ptr.hbm [resolvable:$true] %s1166_s27 }
   0xd   :  { %263 = vmatpush.msrb.mxu0 %v1560_v10  ;;  %v1584_v14 = vld [vmem:[%s2042_s1 + $0x18] sm:$0xff]  ;;  %v1590_v15 = vld [vmem:[%s2042_s1 + $0x10] sm:$0xff]  ;;  %v1596_v16 = vld [vmem:[%s2042_s1 + $0x8] sm:$0xff]  ;;  %s1429_s29 = smov [#allocation4]  }
   0xe   :  { %v1602_v17 = vld [vmem:[%s2042_s1] sm:$0xff]  ;;  %v139_v26 = vld [vmem:[%s2049_s8 + $0x18] sm:$0xff]  ;;  %v138_v27 = vld [vmem:[%s2049_s8 + $0x10] sm:$0xff] }
   0xf   :  { %264 = vmatpush.msrb.mxu0 %v1566_v11  ;;  %v1335_v19 = vld [vmem:[%s2048_s7] ss:$0 sm:$0xff]  ;;  %156 = vmatpush.msra.mxu2 %v139_v26  ;;  %v137_v28 = vld [vmem:[%s2049_s8 + $0x8] sm:$0xff]  ;;  %v314_v5 = vld [vmem:[%s2051_s10 + $0x18] sm:$0xff] }
  0x10   :  { %v136_v30 = vld [vmem:[%s2049_s8] sm:$0xff]  ;;  %v1665_v56 = vld [vmem:[%s2043_s2 + $0x8] sm:$0xff]  ;;  %v313_v7 = vld [vmem:[%s2051_s10 + $0x10] sm:$0xff] }
  0x11   :  { %265 = vmatpush.msrb.mxu0 %v1572_v12  ;;  %157 = vmatpush.msra.mxu2 %v138_v27  ;;  %v1336_v35 = vld [vmem:[%s2046_s5] ss:$0 sm:$0xff]  ;;  %v312_v8 = vld [vmem:[%s2051_s10 + $0x8] sm:$0xff] }
  0x12   :  { %1197 = vmatmul.msk.f32.gmra.mxu1 %vm75_vm0, %v1551_v9  ;;  %v1337_v41 = vld [vmem:[%s2050_s9] ss:$0 sm:$0xff] }
  0x13   :  { %266 = vmatpush.msrb.mxu0 %v1578_v13  ;;  %158 = vmatpush.msra.mxu2 %v137_v28  ;;  %v1654_v48 = vld [vmem:[%s2043_s2] sm:$0xff]  ;;  %s1178_s2 = sshll.u32 %s1429_s29, 4  ;;  %s1179_s2 = int_to_ptr.vmem [resolvable:$true] %s1178_s2 }
  0x14   :  { %1195 = vmatmul.msk.f32.gmra.mxu0 %vm75_vm0, %v1551_v9 }
  0x15   :  { %267 = vmatpush.msrb.mxu0 %v1584_v14  ;;  %159 = vmatpush.msra.mxu2 %v136_v30 }
  0x16   :  { %1198 = vmatmul.msk.f32.vlgmr.msra.gmra.mxu2 %vm75_vm0, %v1536_v6 }
  0x17   :  { %268 = vmatpush.msrb.mxu0 %v1590_v15  ;;  %337 = vmatpush.msrb.mxu2 %v314_v5 }
  0x19   :  { %269 = vmatpush.msrb.mxu0 %v1596_v16  ;;  %338 = vmatpush.msrb.mxu2 %v313_v7  ;;  %v1340_v7 = vld [vmem:[%s2050_s9 + $0x1] ss:$0 sm:$0xff] }
  0x1b   :  { %270 = vmatpush.msrb.mxu0 %v1602_v17  ;;  %339 = vmatpush.msrb.mxu2 %v312_v8 }
  0x1e   :  { %1199 = vmatmul.msk.f32.gmra.mxu2 %vm75_vm0, %v1551_v9 }
  0x87   :  { %v130_v18 = vpop.f32.mrf.mxu1 }
  0x88   :  { %v131_v22 = vadd.f32 %v1335_v19, %v130_v18  ;;  %v311_v18 = vld [vmem:[%s2051_s10] sm:$0xff] }
  0x89   :  { %v99_v34 = vpop.f32.mrf.mxu0  ;;  %340 = vmatpush.msrb.mxu2 %v311_v18 }
  0x8a   :  { %v173_v24 = vmul.f32 %v131_v22, %v1566_v11  ;;  %v171_v29 = vmul.f32 %v131_v22, %v1578_v13  ;;  %v169_v32 = vmul.f32 %v131_v22, %v1590_v15  ;;  %v167_v36 = vmul.f32 %v131_v22, %v1602_v17  ;;  %v350_v22 = vld [vmem:[%s2053_s12 + $0x10] sm:$0xff] }
  0x8b   :  { %v100_v37 = vadd.f32 %v1336_v35, %v99_v34 }
  0x8f   :  { %v133_v20 = vpop.f32.mrf.mxu1 }
  0x90   :  { %v134_v21 = vadd.f32 %v1335_v19, %v133_v20  ;;  %v355_v19 = vld [vmem:[%s2054_s13 + $0x18] sm:$0xff] }
  0x91   :  { %v102_v38 = vpop.f32.mrf.mxu0  ;;  %v351_v20 = vld [vmem:[%s2053_s12 + $0x18] sm:$0xff]  ;;  %368 = vmatpush.msra.mxu0 %v355_v19 }
  0x92   :  { %v174_v23 = vmul.f32 %v134_v21, %v1560_v10  ;;  %v172_v25 = vmul.f32 %v134_v21, %v1572_v12  ;;  %v170_v31 = vmul.f32 %v134_v21, %v1584_v14  ;;  %v168_v33 = vmul.f32 %v134_v21, %v1596_v16  ;;  %v354_v21 = vld [vmem:[%s2054_s13 + $0x10] sm:$0xff] }
  0x93   :  { %v103_v39 = vadd.f32 %v1336_v35, %v102_v38  ;;  %369 = vmatpush.msra.mxu0 %v354_v21  ;;  %v349_v38 = vld [vmem:[%s2053_s12 + $0x8] sm:$0xff] }
  0x94   :  { %1200 = vmatpush.xpose.msk.msra.mxu3 %vm75_vm0, %v174_v23 }
  0x98   :  { %1201 = vmatpush.xpose.msk.msra.mxu3 %vm75_vm0, %v173_v24 }
  0x99   :  { %v161_v40 = vpop.f32.mrf.mxu2 }
  0x9a   :  { %v162_v42 = vadd.f32 %v1337_v41, %v161_v40  ;;  %v348_v40 = vld [vmem:[%s2053_s12] sm:$0xff] }
  0x9c   :  { %1202 = vmatpush.xpose.msk.msra.mxu3 %vm75_vm0, %v172_v25  ;;  %v181_v46 = vmul.f32 %v162_v42, %v1566_v11  ;;  %v179_v49 = vmul.f32 %v162_v42, %v1578_v13  ;;  %v177_v54 = vmul.f32 %v162_v42, %v1590_v15  ;;  %v175_v60 = vmul.f32 %v162_v42, %v1602_v17 }
  0xa0   :  { %1203 = vmatpush.xpose.msk.msra.mxu3 %vm75_vm0, %v171_v29 }
  0xa1   :  { %v164_v43 = vpop.f32.mrf.mxu2 }
  0xa2   :  { %v165_v44 = vadd.f32 %v1337_v41, %v164_v43  ;;  %v1338_v41 = vld [vmem:[%s2052_s11] ss:$0 sm:$0xff] }
  0xa4   :  { %1204 = vmatpush.xpose.msk.msra.mxu3 %vm75_vm0, %v170_v31  ;;  %v182_v45 = vmul.f32 %v165_v44, %v1560_v10  ;;  %v180_v47 = vmul.f32 %v165_v44, %v1572_v12  ;;  %v178_v52 = vmul.f32 %v165_v44, %v1584_v14  ;;  %v176_v55 = vmul.f32 %v165_v44, %v1596_v16 }
  0xa6   :  { %286 = vmatpush.msrb.mxu1 %v182_v45 }
  0xa8   :  { %1205 = vmatpush.xpose.msk.msra.mxu3 %vm75_vm0, %v169_v32  ;;  %287 = vmatpush.msrb.mxu1 %v181_v46  ;;  %v1223_v46 = vld [vmem:[%s2045_s4 + $0x38] sm:$0xff] }
  0xa9   :  { %444 = vmatpush.msra.mxu2 %v1223_v46 }
  0xaa   :  { %288 = vmatpush.msrb.mxu1 %v180_v47  ;;  %v1222_v47 = vld [vmem:[%s2045_s4 + $0x30] sm:$0xff] }
  0xab   :  { %445 = vmatpush.msra.mxu2 %v1222_v47 }
  0xac   :  { %1206 = vmatpush.xpose.msk.msra.mxu3 %vm75_vm0, %v168_v33  ;;  %289 = vmatpush.msrb.mxu1 %v179_v49  ;;  %v1229_v49 = vld [vmem:[%s2047_s6 + $0x30] sm:$0xff] }
  0xae   :  { %290 = vmatpush.msrb.mxu1 %v178_v52  ;;  %v1228_v52 = vld [vmem:[%s2047_s6 + $0x28] sm:$0xff] }
  0xb0   :  { %1207 = vmatpush.xpose.msk.msra.mxu3 %vm75_vm0, %v167_v36  ;;  %291 = vmatpush.msrb.mxu1 %v177_v54  ;;  %v1220_v54 = vld [vmem:[%s2045_s4 + $0x20] sm:$0xff] }
  0xb2   :  { %292 = vmatpush.msrb.mxu1 %v176_v55  ;;  %v1227_v55 = vld [vmem:[%s2047_s6 + $0x20] sm:$0xff] }
  0xb3   :  { %1208 = vmatmul.msk.f32.vlgmr.msra.gmra.mxu3 %vm75_vm0, %v100_v37  ;;  %v353_v37 = vld [vmem:[%s2054_s13 + $0x8] sm:$0xff] }
  0xb4   :  { %293 = vmatpush.msrb.mxu1 %v175_v60  ;;  %370 = vmatpush.msra.mxu0 %v353_v37 }
  0xb6   :  { %397 = vmatpush.msra.mxu1 %v351_v20 }
  0xb8   :  { %398 = vmatpush.msra.mxu1 %v350_v22  ;;  %v1342_v22 = vld [vmem:[%s2048_s7 + $0x1] ss:$0 sm:$0xff] }
  0xba   :  { %399 = vmatpush.msra.mxu1 %v349_v38 }
  0xbb   :  { %1209 = vmatmul.msk.f32.gmra.mxu3 %vm75_vm0, %v103_v39  ;;  %v352_v39 = vld [vmem:[%s2054_s13] sm:$0xff] }
  0xbc   :  { %371 = vmatpush.msra.mxu0 %v352_v39  ;;  %400 = vmatpush.msra.mxu1 %v348_v40 }
 0x136   :  { %v230_v50 = vpop.f32.mrf.mxu3 }
 0x137   :  { %v231_v51 = vadd.f32 %v230_v50, %v1654_v48  ;;  %v1236_v50 = vld [vmem:[%s2049_s8 + $0x30] sm:$0xff] }
 0x139   :  { %v237_v53 = vsel %vm236_vm1, %v231_v51, -inf }
 0x13a   :  { %238 = vmax.xlane.f32.xlu0 %v237_v53  ;;  %v1235_v53 = vld [vmem:[%s2049_s8 + $0x28] sm:$0xff] }
 0x13e   :  { %v233_v57 = vpop.f32.mrf.mxu3 }
 0x13f   :  { %v234_v58 = vadd.f32 %v233_v57, %v1665_v56  ;;  %v1234_v57 = vld [vmem:[%s2049_s8 + $0x20] sm:$0xff] }
 0x141   :  { %v240_v59 = vsel %vm236_vm1, %v234_v58, -inf }
 0x142   :  { %241 = vmax.xlane.f32.xlu0 %v240_v59  ;;  %v1339_v59 = vld [vmem:[%s2055_s14] ss:$0 sm:$0xff] }
 0x1ad   :  { %v239_v61 = vpop.xlane.xlu0 %238 }
 0x1ae   :  { %v243_v62 = vsub.f32 %v231_v51, %v239_v61  ;;  %v1221_v51 = vld [vmem:[%s2045_s4 + $0x28] sm:$0xff] }
 0x1af   :  { %446 = vmatpush.msra.mxu2 %v1221_v51  ;;  %v1269_v51 = vld [vmem:[%s2054_s13 + $0x38] sm:$0xff] }
 0x1b0   :  { %v245_v63 = vmul.f32 1.442695, %v243_v62 }
 0x1b1   :  { %447 = vmatpush.msra.mxu2 %v1220_v54  ;;  %v1266_v54 = vld [vmem:[%s2054_s13 + $0x20] sm:$0xff] }
 0x1b2   :  { %1350 = vpow2.f32 %v245_v63 }
 0x1b5   :  { %v242_v0 = vpop.xlane.xlu0 %241 }
 0x1b6   :  { %v244_v1 = vsub.f32 %v234_v58, %v242_v0 }
 0x1b8   :  { %v1351_v2 = vpop.eup %1350  ;;  %v247_v3 = vmul.f32 1.442695, %v244_v1 }
 0x1b9   :  { %1210 = vmatmul.msk.f32.vlgmr.msrb.gmra.mxu0 %vm236_vm1, %v1351_v2  ;;  %1212 = vmatmul.msk.f32.vlgmr.msrb.gmra.mxu1 %vm236_vm1, %v1351_v2 }
 0x1ba   :  { %1352 = vpow2.f32 %v247_v3 }
 0x1c0   :  { %v1353_v4 = vpop.eup %1352 }
 0x1c1   :  { %1211 = vmatmul.msk.f32.gmra.mxu0 %vm236_vm1, %v1353_v4  ;;  %1213 = vmatmul.msk.f32.gmra.mxu1 %vm236_vm1, %v1353_v4 }
 0x1c9   :  { %1216 = vmatmul.msk.f32.vlgmr.msra.gmra.mxu0 %vm75_vm0, %v1536_v6  ;;  %v1230_v6 = vld [vmem:[%s2047_s6 + $0x38] sm:$0xff] }
 0x1ca   :  { %477 = vmatpush.msrb.mxu3 %v1230_v6 }
 0x1cc   :  { %478 = vmatpush.msrb.mxu3 %v1229_v49 }
 0x1ce   :  { %479 = vmatpush.msrb.mxu3 %v1228_v52  ;;  %v1268_v52 = vld [vmem:[%s2054_s13 + $0x30] sm:$0xff] }
 0x1d0   :  { %480 = vmatpush.msrb.mxu3 %v1227_v55 }
 0x1d1   :  { %1217 = vmatmul.msk.f32.gmra.mxu0 %vm75_vm0, %v1551_v9  ;;  %v1237_v9 = vld [vmem:[%s2049_s8 + $0x38] sm:$0xff] }
 0x1d2   :  { %510 = vmatpush.msrb.mxu0 %v1237_v9 }
 0x1d4   :  { %511 = vmatpush.msrb.mxu0 %v1236_v50 }
 0x1d6   :  { %512 = vmatpush.msrb.mxu0 %v1235_v53  ;;  %v1267_v53 = vld [vmem:[%s2054_s13 + $0x28] sm:$0xff] }
 0x1d8   :  { %513 = vmatpush.msrb.mxu0 %v1234_v57 }
 0x236   :  { %v272_v23 = vpop.f32.mrf.mxu0  ;;  %v295_v28 = vpop.f32.mrf.mxu1 }
 0x237   :  { %1354 = vrcp.f32 %v272_v23 }
 0x23d   :  { %v1355_v24 = vpop.eup %1354 }
 0x23e   :  { %v303_v25 = vmul.f32 %v1355_v24, %v272_v23  ;;  %v275_v26 = vpop.f32.mrf.mxu0  ;;  %v298_v35 = vpop.f32.mrf.mxu1 }
 0x23f   :  { %1356 = vrcp.f32 %v275_v26 }
 0x240   :  { %v305_v27 = vsub.f32 2.0, %v303_v25 }
 0x242   :  { %v307_v29 = vmul.f32 %v1355_v24, %v305_v27 }
 0x244   :  { %v309_v30 = vmul.f32 %v307_v29, %v295_v28 }
 0x245   :  { %v1357_v31 = vpop.eup %1356 }
 0x246   :  { %v304_v32 = vmul.f32 %v1357_v31, %v275_v26  ;;  %1214 = vmatmul.msk.f32.vlgmr.msrb.gmra.mxu2 %vm75_vm0, %v309_v30  ;;  %v373_v58 = vpop.f32.mrf.mxu0 }
 0x247   :  { %616 = vmatpush.msrb.mxu2 %v1560_v10 }
 0x248   :  { %v306_v33 = vsub.f32 2.0, %v304_v32 }
 0x249   :  { %617 = vmatpush.msrb.mxu2 %v1566_v11 }
 0x24a   :  { %v308_v34 = vmul.f32 %v1357_v31, %v306_v33 }
 0x24b   :  { %618 = vmatpush.msrb.mxu2 %v1572_v12 }
 0x24c   :  { %v310_v36 = vmul.f32 %v308_v34, %v298_v35 }
 0x24d   :  { %619 = vmatpush.msrb.mxu2 %v1578_v13 }
 0x24e   :  { %1215 = vmatmul.msk.f32.gmra.mxu2 %vm75_vm0, %v310_v36  ;;  %v376_v0 = vpop.f32.mrf.mxu0 }
 0x24f   :  { %620 = vmatpush.msrb.mxu2 %v1584_v14 }
 0x251   :  { %621 = vmatpush.msrb.mxu2 %v1590_v15 }
 0x253   :  { %622 = vmatpush.msrb.mxu2 %v1596_v16 }
 0x255   :  { %623 = vmatpush.msrb.mxu2 %v1602_v17 }
 0x2c9   :  { %v342_v42 = vpop.f32.mrf.mxu2 }
 0x2ca   :  { %v343_v43 = vadd.f32 %v1338_v41, %v342_v42 }
 0x2cc   :  { %1218 = vmatmul.msk.f32.vlgmr.msra.gmra.mxu1 %vm75_vm0, %v343_v43 }
 0x2d1   :  { %v345_v44 = vpop.f32.mrf.mxu2 }
 0x2d2   :  { %v346_v45 = vadd.f32 %v1338_v41, %v345_v44  ;;  %v1341_v41 = vld [vmem:[%s2046_s5 + $0x1] ss:$0 sm:$0xff] }
 0x2d4   :  { %1219 = vmatmul.msk.f32.gmra.mxu1 %vm75_vm0, %v346_v45 }
 0x349   :  { %v402_v60 = vpop.f32.mrf.mxu1 }
 0x34a   :  { %v403_v61 = vadd.f32 %v402_v60, %v373_v58 }
 0x34c   :  { %v412_v62 = vadd.f32 %v1339_v59, %v403_v61 }
 0x34e   :  { %v1768_v63 = vmax.f32 %v412_v62, 0.0 }
 0x350   :  { %1225 = vmatmul.msk.f32.vlgmr.msra.gmra.mxu2 %vm75_vm0, %v1768_v63  ;;  %1232 = vmatmul.msk.f32.vlgmr.msrb.gmra.mxu3 %vm75_vm0, %v1768_v63 }
 0x351   :  { %1239 = vmatmul.msk.f32.vlgmr.msrb.gmra.mxu0 %vm75_vm0, %v1768_v63  ;;  %v405_v1 = vpop.f32.mrf.mxu1  ;;  %725 = vmatpush.msra.mxu2 %v1269_v51 }
 0x352   :  { %v406_v2 = vadd.f32 %v405_v1, %v376_v0  ;;  %v1258_v1 = vld [vmem:[%s2051_s10 + $0x38] sm:$0xff] }
 0x353   :  { %726 = vmatpush.msra.mxu2 %v1268_v52  ;;  %692 = vmatpush.msra.mxu0 %v1258_v1 }
 0x354   :  { %v413_v3 = vadd.f32 %v1339_v59, %v406_v2  ;;  %v1257_v2 = vld [vmem:[%s2051_s10 + $0x30] sm:$0xff] }
 0x355   :  { %727 = vmatpush.msra.mxu2 %v1267_v53  ;;  %693 = vmatpush.msra.mxu0 %v1257_v2 }
 0x356   :  { %v1776_v4 = vmax.f32 %v413_v3, 0.0  ;;  %v1256_v3 = vld [vmem:[%s2051_s10 + $0x28] sm:$0xff] }
 0x357   :  { %728 = vmatpush.msra.mxu2 %v1266_v54  ;;  %694 = vmatpush.msra.mxu0 %v1256_v3 }
 0x358   :  { %1226 = vmatmul.msk.f32.gmra.mxu2 %vm75_vm0, %v1776_v4  ;;  %1233 = vmatmul.msk.f32.gmra.mxu3 %vm75_vm0, %v1776_v4 }
 0x359   :  { %1240 = vmatmul.msk.f32.gmra.mxu0 %vm75_vm0, %v1776_v4 }
 0x3ce   :  { %v515_v5 = vpop.f32.mrf.mxu0 }
 0x3cf   :  { %v516_v19 = vadd.f32 %v1340_v7, %v515_v5  ;;  %v1264_v5 = vld [vmem:[%s2053_s12 + $0x30] sm:$0xff] }
 0x3d1   :  { %v535_v24 = vmul.f32 %v516_v19, %v1566_v11  ;;  %v533_v29 = vmul.f32 %v516_v19, %v1578_v13  ;;  %v531_v32 = vmul.f32 %v516_v19, %v1590_v15  ;;  %v529_v35 = vmul.f32 %v516_v19, %v1602_v17 }
 0x3d3   :  { %v482_v8 = vpop.f32.mrf.mxu3  ;;  %v449_v40 = vpop.f32.mrf.mxu2 }
 0x3d4   :  { %v483_v27 = vadd.f32 %v1342_v22, %v482_v8  ;;  %v450_v43 = vadd.f32 %v1341_v41, %v449_v40  ;;  %v1277_v40 = vld [vmem:[%s2045_s4 + $0x50] sm:$0xff] }
 0x3d6   :  { %v518_v18 = vpop.f32.mrf.mxu0  ;;  %v527_v31 = vmul.f32 %v483_v27, %v1566_v11  ;;  %v525_v36 = vmul.f32 %v483_v27, %v1578_v13  ;;  %v523_v38 = vmul.f32 %v483_v27, %v1590_v15  ;;  %v521_v42 = vmul.f32 %v483_v27, %v1602_v17 }
 0x3d7   :  { %v519_v20 = vadd.f32 %v1340_v7, %v518_v18 }
 0x3d9   :  { %v536_v21 = vmul.f32 %v519_v20, %v1560_v10  ;;  %v534_v26 = vmul.f32 %v519_v20, %v1572_v12  ;;  %v532_v30 = vmul.f32 %v519_v20, %v1584_v14  ;;  %v530_v33 = vmul.f32 %v519_v20, %v1596_v16 }
 0x3db   :  { %639 = vmatpush.msra.mxu3 %v536_v21  ;;  %v485_v23 = vpop.f32.mrf.mxu3  ;;  %v452_v44 = vpop.f32.mrf.mxu2 }
 0x3dc   :  { %v486_v25 = vadd.f32 %v1342_v22, %v485_v23  ;;  %v453_v45 = vadd.f32 %v1341_v41, %v452_v44  ;;  %v1284_v41 = vld [vmem:[%s2047_s6 + $0x50] sm:$0xff]  ;;  %v1283_v44 = vld [vmem:[%s2047_s6 + $0x48] sm:$0xff] }
 0x3dd   :  { %640 = vmatpush.msra.mxu3 %v535_v24 }
 0x3de   :  { %v528_v28 = vmul.f32 %v486_v25, %v1560_v10  ;;  %v526_v34 = vmul.f32 %v486_v25, %v1572_v12  ;;  %v524_v37 = vmul.f32 %v486_v25, %v1584_v14  ;;  %v522_v39 = vmul.f32 %v486_v25, %v1596_v16 }
 0x3df   :  { %641 = vmatpush.msra.mxu3 %v534_v26 }
 0x3e0   :  { %1241 = vmatpush.xpose.msk.msrb.mxu1 %vm75_vm0, %v528_v28 }
 0x3e1   :  { %642 = vmatpush.msra.mxu3 %v533_v29 }
 0x3e3   :  { %643 = vmatpush.msra.mxu3 %v532_v30  ;;  %v1263_v30 = vld [vmem:[%s2053_s12 + $0x28] sm:$0xff] }
 0x3e4   :  { %1242 = vmatpush.xpose.msk.msrb.mxu1 %vm75_vm0, %v527_v31  ;;  %v1262_v31 = vld [vmem:[%s2053_s12 + $0x20] sm:$0xff] }
 0x3e5   :  { %644 = vmatpush.msra.mxu3 %v531_v32  ;;  %v1343_v32 = vld [vmem:[%s2052_s11 + $0x1] ss:$0 sm:$0xff] }
 0x3e7   :  { %645 = vmatpush.msra.mxu3 %v530_v33 }
 0x3e8   :  { %1243 = vmatpush.xpose.msk.msrb.mxu1 %vm75_vm0, %v526_v34 }
 0x3e9   :  { %646 = vmatpush.msra.mxu3 %v529_v35 }
 0x3ec   :  { %1244 = vmatpush.xpose.msk.msrb.mxu1 %vm75_vm0, %v525_v36 }
 0x3f0   :  { %1245 = vmatpush.xpose.msk.msrb.mxu1 %vm75_vm0, %v524_v37  ;;  %v1278_v37 = vld [vmem:[%s2045_s4 + $0x58] sm:$0xff] }
 0x3f4   :  { %1246 = vmatpush.xpose.msk.msrb.mxu1 %vm75_vm0, %v523_v38  ;;  %v1285_v38 = vld [vmem:[%s2047_s6 + $0x58] sm:$0xff] }
 0x3f8   :  { %1247 = vmatpush.xpose.msk.msrb.mxu1 %vm75_vm0, %v522_v39  ;;  %v1292_v39 = vld [vmem:[%s2049_s8 + $0x58] sm:$0xff] }
 0x3fc   :  { %1248 = vmatpush.xpose.msk.msrb.mxu1 %vm75_vm0, %v521_v42  ;;  %v1291_v42 = vld [vmem:[%s2049_s8 + $0x50] sm:$0xff] }
 0x3ff   :  { %1249 = vmatmul.msk.f32.vlgmr.msrb.gmra.mxu1 %vm75_vm0, %v450_v43  ;;  %v1276_v43 = vld [vmem:[%s2045_s4 + $0x48] sm:$0xff] }
 0x400   :  { %835 = vmatpush.msra.mxu1 %v1285_v38 }
 0x402   :  { %836 = vmatpush.msra.mxu1 %v1284_v41 }
 0x404   :  { %837 = vmatpush.msra.mxu1 %v1283_v44 }
 0x407   :  { %1250 = vmatmul.msk.f32.gmra.mxu1 %vm75_vm0, %v453_v45  ;;  %v1290_v45 = vld [vmem:[%s2049_s8 + $0x48] sm:$0xff] }
 0x47c   :  { %v584_v46 = vpop.f32.mrf.mxu1 }
 0x47d   :  { %v585_v6 = vadd.f32 %v584_v46, %v1654_v48  ;;  %v1275_v46 = vld [vmem:[%s2045_s4 + $0x40] sm:$0xff] }
 0x47f   :  { %v590_v9 = vsel %vm236_vm1, %v585_v6, -inf }
 0x480   :  { %591 = vmax.xlane.f32.xlu1 %v590_v9  ;;  %v1289_v9 = vld [vmem:[%s2049_s8 + $0x40] sm:$0xff] }
 0x484   :  { %v587_v47 = vpop.f32.mrf.mxu1 }
 0x485   :  { %v588_v49 = vadd.f32 %v587_v47, %v1665_v56 }
 0x487   :  { %v593_v50 = vsel %vm236_vm1, %v588_v49, -inf }
 0x488   :  { %594 = vmax.xlane.f32.xlu1 %v593_v50 }
 0x4f3   :  { %v592_v55 = vpop.xlane.xlu1 %591 }
 0x4f4   :  { %v596_v57 = vsub.f32 %v585_v6, %v592_v55  ;;  %v1282_v6 = vld [vmem:[%s2047_s6 + $0x40] sm:$0xff] }
 0x4f5   :  { %838 = vmatpush.msra.mxu1 %v1282_v6  ;;  %v1311_v6 = vld [vmem:[%s2051_s10 + $0x48] sm:$0xff] }
 0x4f6   :  { %v598_v58 = vmul.f32 1.442695, %v596_v57 }
 0x4f8   :  { %1358 = vpow2.f32 %v598_v58 }
 0x4fb   :  { %v595_v59 = vpop.xlane.xlu1 %594 }
 0x4fc   :  { %v597_v60 = vsub.f32 %v588_v49, %v595_v59  ;;  %v1344_v49 = vld [vmem:[%s2055_s14 + $0x1] ss:$0 sm:$0xff] }
 0x4fe   :  { %v1359_v61 = vpop.eup %1358  ;;  %v600_v62 = vmul.f32 1.442695, %v597_v60 }
 0x4ff   :  { %1251 = vmatmul.msk.f32.vlgmr.msrb.gmra.mxu2 %vm236_vm1, %v1359_v61  ;;  %1253 = vmatmul.msk.f32.vlgmr.msra.gmra.mxu3 %vm236_vm1, %v1359_v61  ;;  %v1346_v61 = vld [vmem:[%s2048_s7 + $0x2] ss:$0 sm:$0xff] }
 0x500   :  { %1360 = vpow2.f32 %v600_v62  ;;  %868 = vmatpush.msrb.mxu2 %v1292_v39 }
 0x502   :  { %869 = vmatpush.msrb.mxu2 %v1291_v42 }
 0x504   :  { %870 = vmatpush.msrb.mxu2 %v1290_v45  ;;  %v1313_v45 = vld [vmem:[%s2051_s10 + $0x58] sm:$0xff] }
 0x506   :  { %v1361_v0 = vpop.eup %1360  ;;  %871 = vmatpush.msrb.mxu2 %v1289_v9  ;;  %v1310_v9 = vld [vmem:[%s2051_s10 + $0x40] sm:$0xff] }
 0x507   :  { %1252 = vmatmul.msk.f32.gmra.mxu2 %vm236_vm1, %v1361_v0  ;;  %1254 = vmatmul.msk.f32.gmra.mxu3 %vm236_vm1, %v1361_v0 }
 0x50f   :  { %1270 = vmatmul.msk.f32.vlgmr.msra.gmra.mxu2 %vm75_vm0, %v1768_v63  ;;  %v1255_v63 = vld [vmem:[%s2051_s10 + $0x20] sm:$0xff] }
 0x510   :  { %695 = vmatpush.msra.mxu0 %v1255_v63  ;;  %v1347_v63 = vld [vmem:[%s2050_s9 + $0x2] ss:$0 sm:$0xff]  ;;  %1050 = vmatpush.msra.mxu2 %v1313_v45 }
 0x512   :  { %802 = vmatpush.msrb.mxu0 %v1278_v37 }
 0x514   :  { %803 = vmatpush.msrb.mxu0 %v1277_v40 }
 0x516   :  { %804 = vmatpush.msrb.mxu0 %v1276_v43 }
 0x517   :  { %1271 = vmatmul.msk.f32.gmra.mxu2 %vm75_vm0, %v1776_v4  ;;  %v1265_v4 = vld [vmem:[%s2053_s12 + $0x38] sm:$0xff] }
 0x518   :  { %754 = vmatpush.msrb.mxu3 %v1265_v4  ;;  %805 = vmatpush.msrb.mxu0 %v1275_v46  ;;  %v1312_v46 = vld [vmem:[%s2051_s10 + $0x50] sm:$0xff] }
 0x519   :  { %1051 = vmatpush.msra.mxu2 %v1312_v46 }
 0x51a   :  { %755 = vmatpush.msrb.mxu3 %v1264_v5 }
 0x51b   :  { %1052 = vmatpush.msra.mxu2 %v1311_v6 }
 0x51c   :  { %756 = vmatpush.msrb.mxu3 %v1263_v30 }
 0x51d   :  { %1053 = vmatpush.msra.mxu2 %v1310_v9 }
 0x51e   :  { %757 = vmatpush.msrb.mxu3 %v1262_v31 }
 0x582   :  { %v625_v7 = vpop.f32.mrf.mxu2  ;;  %v648_v21 = vpop.f32.mrf.mxu3 }
 0x583   :  { %1362 = vrcp.f32 %v625_v7 }
 0x589   :  { %v1363_v8 = vpop.eup %1362 }
 0x58a   :  { %v656_v18 = vmul.f32 %v1363_v8, %v625_v7  ;;  %v628_v19 = vpop.f32.mrf.mxu2  ;;  %v651_v28 = vpop.f32.mrf.mxu3 }
 0x58b   :  { %1364 = vrcp.f32 %v628_v19 }
 0x58c   :  { %v658_v20 = vsub.f32 2.0, %v656_v18 }
 0x58e   :  { %v660_v22 = vmul.f32 %v1363_v8, %v658_v20 }
 0x590   :  { %v662_v23 = vmul.f32 %v660_v22, %v648_v21 }
 0x591   :  { %v1365_v24 = vpop.eup %1364 }
 0x592   :  { %v657_v25 = vmul.f32 %v1365_v24, %v628_v19  ;;  %1260 = vmatmul.msk.f32.vlgmr.msra.gmra.mxu0 %vm75_vm0, %v662_v23  ;;  %v730_v47 = vpop.f32.mrf.mxu2 }
 0x593   :  { %974 = vmatpush.msra.mxu0 %v1560_v10 }
 0x594   :  { %v659_v26 = vsub.f32 2.0, %v657_v25 }
 0x595   :  { %975 = vmatpush.msra.mxu0 %v1566_v11 }
 0x596   :  { %v661_v27 = vmul.f32 %v1365_v24, %v659_v26 }
 0x597   :  { %976 = vmatpush.msra.mxu0 %v1572_v12 }
 0x598   :  { %v663_v29 = vmul.f32 %v661_v27, %v651_v28 }
 0x599   :  { %977 = vmatpush.msra.mxu0 %v1578_v13 }
 0x59a   :  { %1261 = vmatmul.msk.f32.gmra.mxu0 %vm75_vm0, %v663_v29  ;;  %v733_v54 = vpop.f32.mrf.mxu2 }
 0x59b   :  { %978 = vmatpush.msra.mxu0 %v1584_v14 }
 0x59d   :  { %979 = vmatpush.msra.mxu0 %v1590_v15 }
 0x59f   :  { %980 = vmatpush.msra.mxu0 %v1596_v16 }
 0x5a1   :  { %981 = vmatpush.msra.mxu0 %v1602_v17 }
 0x60f   :  { %v697_v33 = vpop.f32.mrf.mxu0 }
 0x610   :  { %v698_v34 = vadd.f32 %v1343_v32, %v697_v33 }
 0x612   :  { %1272 = vmatmul.msk.f32.vlgmr.msrb.gmra.mxu3 %vm75_vm0, %v698_v34 }
 0x617   :  { %v700_v35 = vpop.f32.mrf.mxu0 }
 0x618   :  { %v701_v36 = vadd.f32 %v1343_v32, %v700_v35  ;;  %v1324_v35 = vld [vmem:[%s2054_s13 + $0x58] sm:$0xff] }
 0x61a   :  { %1273 = vmatmul.msk.f32.gmra.mxu3 %vm75_vm0, %v701_v36  ;;  %v1323_v36 = vld [vmem:[%s2054_s13 + $0x50] sm:$0xff] }
 0x695   :  { %v759_v50 = vpop.f32.mrf.mxu3 }
 0x696   :  { %v760_v51 = vadd.f32 %v759_v50, %v730_v47  ;;  %v1320_v47 = vld [vmem:[%s2053_s12 + $0x58] sm:$0xff] }
 0x698   :  { %v770_v52 = vadd.f32 %v1344_v49, %v760_v51 }
 0x69a   :  { %v1921_v53 = vmax.f32 %v770_v52, 0.0 }
 0x69c   :  { %1280 = vmatmul.msk.f32.vlgmr.msrb.gmra.mxu0 %vm75_vm0, %v1921_v53  ;;  %1287 = vmatmul.msk.f32.vlgmr.msra.gmra.mxu1 %vm75_vm0, %v1921_v53 }
 0x69d   :  { %1294 = vmatmul.msk.f32.vlgmr.msrb.gmra.mxu2 %vm75_vm0, %v1921_v53  ;;  %v762_v55 = vpop.f32.mrf.mxu3  ;;  %1083 = vmatpush.msrb.mxu0 %v1324_v35 }
 0x69e   :  { %v763_v57 = vadd.f32 %v762_v55, %v733_v54 }
 0x69f   :  { %1084 = vmatpush.msrb.mxu0 %v1323_v36 }
 0x6a0   :  { %v771_v58 = vadd.f32 %v1344_v49, %v763_v57  ;;  %v1319_v49 = vld [vmem:[%s2053_s12 + $0x50] sm:$0xff] }
 0x6a2   :  { %v1929_v59 = vmax.f32 %v771_v58, 0.0 }
 0x6a4   :  { %1281 = vmatmul.msk.f32.gmra.mxu0 %vm75_vm0, %v1929_v59  ;;  %1288 = vmatmul.msk.f32.gmra.mxu1 %vm75_vm0, %v1929_v59 }
 0x6a5   :  { %1295 = vmatmul.msk.f32.gmra.mxu2 %vm75_vm0, %v1929_v59 }
 0x719   :  { %v840_v60 = vpop.f32.mrf.mxu1  ;;  %v807_v27 = vpop.f32.mrf.mxu0 }
 0x71a   :  { %v841_v2 = vadd.f32 %v1346_v61, %v840_v60 }
 0x71c   :  { %v885_v5 = vmul.f32 %v841_v2, %v1566_v11  ;;  %v883_v22 = vmul.f32 %v841_v2, %v1578_v13  ;;  %v881_v25 = vmul.f32 %v841_v2, %v1590_v15  ;;  %v879_v28 = vmul.f32 %v841_v2, %v1602_v17  ;;  %v1318_v2 = vld [vmem:[%s2053_s12 + $0x48] sm:$0xff] }
 0x720   :  { %v873_v62 = vpop.f32.mrf.mxu2 }
 0x721   :  { %v843_v0 = vpop.f32.mrf.mxu1  ;;  %v874_v7 = vadd.f32 %v1347_v63, %v873_v62  ;;  %v810_v29 = vpop.f32.mrf.mxu0 }
 0x722   :  { %v844_v1 = vadd.f32 %v1346_v61, %v843_v0 }
 0x723   :  { %v893_v20 = vmul.f32 %v874_v7, %v1566_v11  ;;  %v891_v23 = vmul.f32 %v874_v7, %v1578_v13  ;;  %v889_v11 = vmul.f32 %v874_v7, %v1590_v15  ;;  %v887_v13 = vmul.f32 %v874_v7, %v1602_v17 }
 0x724   :  { %v886_v3 = vmul.f32 %v844_v1, %v1560_v10  ;;  %v884_v19 = vmul.f32 %v844_v1, %v1572_v12  ;;  %v882_v24 = vmul.f32 %v844_v1, %v1584_v14  ;;  %v880_v26 = vmul.f32 %v844_v1, %v1596_v16 }
 0x726   :  { %1296 = vmatpush.xpose.msk.msra.mxu3 %vm75_vm0, %v886_v3  ;;  %v1317_v3 = vld [vmem:[%s2053_s12 + $0x40] sm:$0xff] }
 0x728   :  { %v876_v4 = vpop.f32.mrf.mxu2 }
 0x729   :  { %v877_v8 = vadd.f32 %v1347_v63, %v876_v4  ;;  %v1348_v63 = vld [vmem:[%s2052_s11 + $0x2] ss:$0 sm:$0xff] }
 0x72a   :  { %1297 = vmatpush.xpose.msk.msra.mxu3 %vm75_vm0, %v885_v5 }
 0x72b   :  { %v894_v18 = vmul.f32 %v877_v8, %v1560_v10  ;;  %v892_v21 = vmul.f32 %v877_v8, %v1572_v12  ;;  %v890_v10 = vmul.f32 %v877_v8, %v1584_v14  ;;  %v888_v12 = vmul.f32 %v877_v8, %v1596_v16  ;;  %v1345_v14 = vld [vmem:[%s2046_s5 + $0x2] ss:$0 sm:$0xff] }
 0x72c   :  { %v808_v15 = vadd.f32 %v1345_v14, %v807_v27  ;;  %v811_v30 = vadd.f32 %v1345_v14, %v810_v29 }
 0x72d   :  { %997 = vmatpush.msrb.mxu1 %v894_v18 }
 0x72e   :  { %1298 = vmatpush.xpose.msk.msra.mxu3 %vm75_vm0, %v884_v19  ;;  %v1349_v19 = vld [vmem:[%s2055_s14 + $0x2] ss:$0 sm:$0xff]  ;;  %s1426_s14 = smov [#allocation2]  }
 0x72f   :  { %998 = vmatpush.msrb.mxu1 %v893_v20  ;;  %s1164_s24 = sshll.u32 %s1426_s14, 4  ;;  %s1165_s24 = int_to_ptr.vmem [resolvable:$true] %s1164_s24 }
 0x731   :  { %999 = vmatpush.msrb.mxu1 %v892_v21 }
 0x732   :  { %1299 = vmatpush.xpose.msk.msra.mxu3 %vm75_vm0, %v883_v22 }
 0x733   :  { %1000 = vmatpush.msrb.mxu1 %v891_v23 }
 0x735   :  { %1001 = vmatpush.msrb.mxu1 %v890_v10 }
 0x736   :  { %1300 = vmatpush.xpose.msk.msra.mxu3 %vm75_vm0, %v882_v24 }
 0x737   :  { %1002 = vmatpush.msrb.mxu1 %v889_v11 }
 0x739   :  { %1003 = vmatpush.msrb.mxu1 %v888_v12 }
 0x73a   :  { %1301 = vmatpush.xpose.msk.msra.mxu3 %vm75_vm0, %v881_v25 }
 0x73b   :  { %1004 = vmatpush.msrb.mxu1 %v887_v13  ;;  %v64_v13 = vld [vmem:[%s2044_s3] sm:$0x3]  ;;  %s1180_s3 = sshll.u32 %s2057_s16, 4  ;;  %s1181_s3 = int_to_ptr.hbm [resolvable:$true] %s1180_s3 }
 0x73d   :  { %1112 = vmatpush.msra.mxu1 %v1320_v47 }
 0x73e   :  { %1302 = vmatpush.xpose.msk.msra.mxu3 %vm75_vm0, %v880_v26 }
 0x73f   :  { %1113 = vmatpush.msra.mxu1 %v1319_v49 }
 0x741   :  { %1114 = vmatpush.msra.mxu1 %v1318_v2 }
 0x742   :  { %1303 = vmatpush.xpose.msk.msra.mxu3 %vm75_vm0, %v879_v28 }
 0x743   :  { %1115 = vmatpush.msra.mxu1 %v1317_v3 }
 0x745   :  { %1304 = vmatmul.msk.f32.vlgmr.msra.gmra.mxu3 %vm75_vm0, %v808_v15 }
 0x74d   :  { %1305 = vmatmul.msk.f32.gmra.mxu3 %vm75_vm0, %v811_v30 }
 0x7c8   :  { %v942_v31 = vpop.f32.mrf.mxu3 }
 0x7c9   :  { %v943_v16 = vadd.f32 %v942_v31, %v1654_v48  ;;  %v1322_v48 = vld [vmem:[%s2054_s13 + $0x48] sm:$0xff] }
 0x7ca   :  { %1085 = vmatpush.msrb.mxu0 %v1322_v48 }
 0x7cb   :  { %v948_v32 = vsel %vm236_vm1, %v943_v16, -inf }
 0x7cc   :  { %949 = vmax.xlane.f32.xlu2 %v948_v32 }
 0x7d0   :  { %v945_v33 = vpop.f32.mrf.mxu3 }
 0x7d1   :  { %v946_v34 = vadd.f32 %v945_v33, %v1665_v56  ;;  %v1321_v56 = vld [vmem:[%s2054_s13 + $0x40] sm:$0xff]  ;;  %s1428_s13 = smov 8  }
 0x7d2   :  { %1086 = vmatpush.msrb.mxu0 %v1321_v56 }
 0x7d3   :  { %v951_v17 = vsel %vm236_vm1, %v946_v34, -inf }
 0x7d4   :  { %952 = vmax.xlane.f32.xlu2 %v951_v17 }
 0x83f   :  { %v950_v37 = vpop.xlane.xlu2 %949 }
 0x840   :  { %v954_v38 = vsub.f32 %v943_v16, %v950_v37 }
 0x842   :  { %v956_v39 = vmul.f32 1.442695, %v954_v38 }
 0x844   :  { %1366 = vpow2.f32 %v956_v39 }
 0x847   :  { %v953_v40 = vpop.xlane.xlu2 %952 }
 0x848   :  { %v955_v41 = vsub.f32 %v946_v34, %v953_v40 }
 0x84a   :  { %v1367_v42 = vpop.eup %1366  ;;  %v958_v43 = vmul.f32 1.442695, %v955_v41 }
 0x84b   :  { %1306 = vmatmul.msk.f32.vlgmr.msra.gmra.mxu0 %vm236_vm1, %v1367_v42  ;;  %1308 = vmatmul.msk.f32.vlgmr.msrb.gmra.mxu1 %vm236_vm1, %v1367_v42 }
 0x84c   :  { %1368 = vpow2.f32 %v958_v43 }
 0x852   :  { %v1369_v44 = vpop.eup %1368 }
 0x853   :  { %1307 = vmatmul.msk.f32.gmra.mxu0 %vm236_vm1, %v1369_v44  ;;  %1309 = vmatmul.msk.f32.gmra.mxu1 %vm236_vm1, %v1369_v44 }
 0x85b   :  { %1325 = vmatmul.msk.f32.vlgmr.msrb.gmra.mxu0 %vm75_vm0, %v1921_v53 }
 0x863   :  { %1326 = vmatmul.msk.f32.gmra.mxu0 %vm75_vm0, %v1929_v59 }
 0x8c8   :  { %v983_v50 = vpop.f32.mrf.mxu0  ;;  %v1006_v55 = vpop.f32.mrf.mxu1 }
 0x8c9   :  { %1370 = vrcp.f32 %v983_v50 }
 0x8cf   :  { %v1371_v51 = vpop.eup %1370 }
 0x8d0   :  { %v1014_v52 = vmul.f32 %v1371_v51, %v983_v50  ;;  %v986_v53 = vpop.f32.mrf.mxu0  ;;  %v1009_v0 = vpop.f32.mrf.mxu1 }
 0x8d1   :  { %1372 = vrcp.f32 %v986_v53 }
 0x8d2   :  { %v1016_v54 = vsub.f32 2.0, %v1014_v52 }
 0x8d4   :  { %v1018_v57 = vmul.f32 %v1371_v51, %v1016_v54 }
 0x8d6   :  { %v1020_v58 = vmul.f32 %v1018_v57, %v1006_v55 }
 0x8d7   :  { %v1373_v59 = vpop.eup %1372 }
 0x8d8   :  { %v1015_v60 = vmul.f32 %v1373_v59, %v986_v53  ;;  %1315 = vmatmul.msk.f32.vlgmr.msra.gmra.mxu2 %vm75_vm0, %v1020_v58  ;;  %v1088_v18 = vpop.f32.mrf.mxu0 }
 0x8da   :  { %v1017_v61 = vsub.f32 2.0, %v1015_v60 }
 0x8dc   :  { %v1019_v62 = vmul.f32 %v1373_v59, %v1017_v61 }
 0x8de   :  { %v1021_v1 = vmul.f32 %v1019_v62, %v1009_v0 }
 0x8e0   :  { %1316 = vmatmul.msk.f32.gmra.mxu2 %vm75_vm0, %v1021_v1  ;;  %v1091_v10 = vpop.f32.mrf.mxu0 }
 0x95b   :  { %v1055_v4 = vpop.f32.mrf.mxu2 }
 0x95c   :  { %v1056_v5 = vadd.f32 %v1348_v63, %v1055_v4 }
 0x95e   :  { %1327 = vmatmul.msk.f32.vlgmr.msra.gmra.mxu1 %vm75_vm0, %v1056_v5 }
 0x963   :  { %v1058_v7 = vpop.f32.mrf.mxu2 }
 0x964   :  { %v1059_v8 = vadd.f32 %v1348_v63, %v1058_v7 }
 0x966   :  { %1328 = vmatmul.msk.f32.gmra.mxu1 %vm75_vm0, %v1059_v8 }
 0x9db   :  { %v1117_v20 = vpop.f32.mrf.mxu1 }
 0x9dc   :  { %v1118_v21 = vadd.f32 %v1117_v20, %v1088_v18 }
 0x9de   :  { %v1128_v22 = vadd.f32 %v1349_v19, %v1118_v21 }
 0x9e0   :  { %v1130_v23 = vmax.f32 %v1128_v22, 0.0 }
 0x9e2   :  { %1132 = vst.msk [vmem:[#allocation2] sm:$0xff] %vm75_vm0, %v1130_v23 }
 0x9e3   :  { %v1120_v24 = vpop.f32.mrf.mxu1 }
 0x9e4   :  { %v1121_v11 = vadd.f32 %v1120_v24, %v1091_v10 }
 0x9e6   :  { %v1129_v12 = vadd.f32 %v1349_v19, %v1121_v11 }
 0x9e8   :  { %v1131_v25 = vmax.f32 %v1129_v12, 0.0 }
 0x9ea   :  { %1133 = vst.msk [vmem:[#allocation2 + $0x8] sm:$0xff] %vm75_vm0, %v1131_v25  ;;  %1152 = vmatpush.msrb.mxu2 %v1131_v25 }
 0x9eb   :  { %1172 = dma.vmem_to_hbm [thread:$0]  %s1165_s24, 256, %s1167_s27, [#allocation3], %s1427_s28, %s1427_s28, %s1428_s13  }
 0x9ec   :  { %1153 = vmatpush.msrb.mxu2 %v1130_v23 }
 0x9ed   :  { %1330 = vmatmul.msk.f32.vlgmr.msrb.gmra.mxu2 %vm1134_vm2, %v64_v13 }
 0xa70   :  { %v1155_v26 = vpop.f32.mrf.mxu2 }
 0xa71   :  { %1159 = vst.msk [vmem:[#allocation4] sm:$0x3] %vm1158_vm3, %v1155_v26 }
 0xa72   :  { %1183 = dma.vmem_to_hbm [thread:$0]  %s1179_s2, 32, %s1181_s3, [#allocation5]  }
 0xa73   :  { %1422 = dma.done.wait [#allocation3], 256  }
 0xa74   :  { %1423 = vsyncadd [#allocation3], 4294967040 }
 0xa75   :  { %1424 = dma.done.wait [#allocation5], 32  }
 0xa76   :  { %1425 = vsyncadd [#allocation5], 4294967264 }
 0xa77   :  { %1192 = vsyncpa [#allocation3], 1 }
 0xa78   :  { %1193 = vsyncpa [#allocation5], 1 }

</bundles_post_ra>
